<compile_context>
chip_gen: v7x
topology: tpu7x:2x2x1
jax: 0.10.0
libtpu: 0.0.40
codegen_flags: <defaults>
</compile_context>

<pallas_src>
import functools

import numpy as np
import jax
import jax.numpy as jnp
from jax.experimental import pallas as pl
from jax.experimental.pallas import tpu as pltpu

_EPS = 1e-8
_APRON = 128      # zero apron (lanes) on each side of the flat H*W axis


# ----------------------------------------------------------------------------
# Fused kernel
# ----------------------------------------------------------------------------
def _fused_kernel(xf_ref, wd_ref, w1_ref, b1_ref, w2_ref, b2_ref,
                  wc1_ref, wc2_ref, m_ref, o_ref, pad_ref, col_ref,
                  *, B, Cin, Cout, H, W, K):
    """All activations are stored channel-major: row index = c * B + b,
    lanes = flattened H*W (row-major).  pad_ref holds the current activation
    in lanes [_APRON, _APRON + H*W) with zero aprons on both sides so that a
    spatial shift is just a (lane-offset) slice of the scratch."""
    HW = H * W
    Rin, Rout = Cin * B, Cout * B
    halo = (K - 1) // 2
    f32 = jnp.float32

    def minmax_rows(v):
        # per-(sample, channel) spatial min-max; one row == one (b, c) plane
        mn = jnp.min(v, axis=-1, keepdims=True)
        mx = jnp.max(v, axis=-1, keepdims=True)
        return (v - mn) * pl.reciprocal(mx - mn + _EPS, approx=False)

    def conv_same(w_all_ref, rows_in):
        """KxK stride-1 SAME conv of the activation currently held in
        pad_ref[:rows_in, APRON:APRON+HW] -> (Cout*B, HW), via one MXU matmul
        against the im2col matrix assembled in col_ref."""
        padv = pad_ref[...]                                     # (Rmax, HW+2*APRON)
        for k in range(K * K):
            dh, dw = k // K - halo, k % K - halo
            s = dh * W + dw
            slab = padv[0:rows_in, _APRON + s:_APRON + s + HW]  # (rows_in, HW)
            # border mask (precomputed 0/1 floats) zeroes out-of-image taps
            col_ref[k * rows_in:(k + 1) * rows_in, :] = slab * m_ref[k:k + 1, :]
        cols = col_ref[0:K * K * rows_in, :]                    # (K*K*rows_in, HW)
        return jnp.dot(w_all_ref[...], cols, preferred_element_type=f32)

    xf = xf_ref[...]                                            # (B, Cin*H*W)

    # zero the scratch once so the aprons (and unused rows) read as zeros
    pad_ref[...] = jnp.zeros_like(pad_ref)

    # ---- residual = minmax(downsample(x)):  1x1 conv == block-diag matmul ----
    for c in range(Cin):                 # scatter x into channel-major rows
        pad_ref[c * B:(c + 1) * B, _APRON:_APRON + HW] = xf[:, c * HW:(c + 1) * HW]
    x_cm = pad_ref[0:Rin, _APRON:_APRON + HW]                   # (Cin*B, HW)
    resid = minmax_rows(jnp.dot(wd_ref[...], x_cm, preferred_element_type=f32))

    # ---- out = fc(x.view(B, -1)), written back channel-major ----------------
    y = jnp.dot(xf, w1_ref[...], preferred_element_type=f32) + b1_ref[...]  # (B, HID)
    for c in range(Cin):
        z_c = (jnp.dot(y, w2_ref[:, c * HW:(c + 1) * HW],
                       preferred_element_type=f32)
               + b2_ref[:, c * HW:(c + 1) * HW])                # (B, HW)
        pad_ref[c * B:(c + 1) * B, _APRON:_APRON + HW] = z_c

    # ---- out = minmax(conv1(out)); out = minmax(conv2(out)); out += residual -
    a1 = minmax_rows(conv_same(wc1_ref, Rin))                   # (Cout*B, HW)
    pad_ref[0:Rout, _APRON:_APRON + HW] = a1
    a2 = minmax_rows(conv_same(wc2_ref, Rout))                  # (Cout*B, HW)

    o_ref[...] = (a2 + resid).astype(o_ref.dtype)               # lane-dense store


# ----------------------------------------------------------------------------
# Wrapper-side weight / mask preparation (tiny, layout plumbing only)
# ----------------------------------------------------------------------------
def _block_diag_over_batch(w_oc, batch):
    """(Cout, Cin) -> (Cout*B, Cin*B) for channel-major (c*B + b) rows."""
    return jnp.kron(w_oc, jnp.eye(batch, dtype=w_oc.dtype))


def _conv_weight_matrix(w, batch):
    """Torch conv weight (Cout, Cin, K, K) -> (Cout*B, K*K*Cin*B) im2col matrix,
    column blocks ordered kh-major / kw-minor (matches the kernel's shift loop)."""
    cout, cin, kh, kw = w.shape
    blocks = [_block_diag_over_batch(w[:, :, i, j], batch)
              for i in range(kh) for j in range(kw)]
    return jnp.concatenate(blocks, axis=1)


def _shift_masks(H, W, K):
    """(K*K, H*W) 0/1 float masks marking in-image taps for each (dh, dw)."""
    halo = (K - 1) // 2
    hh, ww = np.meshgrid(np.arange(H), np.arange(W), indexing="ij")
    hh, ww = hh.reshape(1, -1), ww.reshape(1, -1)
    masks = []
    for kh in range(K):
        for kw in range(K):
            dh, dw = kh - halo, kw - halo
            m = ((hh + dh >= 0) & (hh + dh < H) & (ww + dw >= 0) & (ww + dw < W))
            masks.append(m.astype(np.float32))
    return jnp.asarray(np.concatenate(masks, axis=0))


def feature_extract_block_forward(x, params):
    """x: (B, Cin, H, W) f32; params: torch-layout weights (see __main__)."""
    B, Cin, H, W = x.shape
    HW = H * W
    down_w = params["down_w"]           # (Cout, Cin, 1, 1)
    conv1_w = params["conv1_w"]         # (Cout, Cin, 3, 3)
    conv2_w = params["conv2_w"]         # (Cout, Cout, 3, 3)
    Cout = down_w.shape[0]
    K = conv1_w.shape[-1]
    assert ((K - 1) // 2) * (W + 1) <= _APRON, "spatial shift exceeds scratch apron"

    wd_blk = _block_diag_over_batch(down_w[:, :, 0, 0], B)      # (Cout*B, Cin*B)
    wc1 = _conv_weight_matrix(conv1_w, B)                       # (Cout*B, K*K*Cin*B)
    wc2 = _conv_weight_matrix(conv2_w, B)                       # (Cout*B, K*K*Cout*B)
    masks = _shift_masks(H, W, K)                               # (K*K, HW)

    xf = x.reshape(B, Cin * HW)                                 # == torch x.view(B, -1)
    rmax = max(Cin, Cout) * B

    kernel = functools.partial(_fused_kernel, B=B, Cin=Cin, Cout=Cout,
                               H=H, W=W, K=K)
    out_cm = pl.pallas_call(
        kernel,
        out_shape=jax.ShapeDtypeStruct((Cout * B, HW), jnp.float32),
        scratch_shapes=[
            pltpu.VMEM((rmax, HW + 2 * _APRON), jnp.float32),   # apron-padded activation
            pltpu.VMEM((K * K * rmax, HW), jnp.float32),        # im2col columns
        ],
    )(xf, wd_blk, params["fc1_wT"], params["fc1_b"],
      params["fc2_wT"], params["fc2_b"], wc1, wc2, masks)

    # channel-major rows (c_out*B + b) -> NCHW (layout plumbing in the wrapper)
    return out_cm.reshape(Cout, B, H, W).transpose(1, 0, 2, 3)


# ----------------------------------------------------------------------------
# Pure-JAX reference (same normalization assumption) for a loose logic check
# ----------------------------------------------------------------------------
def _reference_forward(x, params):
    def minmax(v):
        mn = v.min(axis=(2, 3), keepdims=True)
        mx = v.max(axis=(2, 3), keepdims=True)
        return (v - mn) / (mx - mn + _EPS)

    def conv(v, w, p):
        return jax.lax.conv_general_dilated(
            v, w, (1, 1), [(p, p), (p, p)],
            dimension_numbers=("NCHW", "OIHW", "NCHW"),
            precision=jax.lax.Precision.HIGHEST)

    B = x.shape[0]
    hi = jax.lax.Precision.HIGHEST
    resid = minmax(conv(x, params["down_w"], 0))
    y = jnp.dot(x.reshape(B, -1), params["fc1_wT"], precision=hi) + params["fc1_b"]
    z = jnp.dot(y, params["fc2_wT"], precision=hi) + params["fc2_b"]
    out = z.reshape(x.shape)
    out = minmax(conv(out, params["conv1_w"], 1))
    out = minmax(conv(out, params["conv2_w"], 1))
    return out + resid


if __name__ == "__main__":
    B = 2
    in_channels = 4
    out_channels = 4
    window_size = 16      # H
    feature_num = 16      # W
    D = in_channels * window_size * feature_num      # 1024
    HID = in_channels * feature_num                  # 64

    key = jax.random.PRNGKey(0)
    ks = jax.random.split(key, 8)

    x = jax.random.normal(ks[0], (B, in_channels, window_size, feature_num),
                          jnp.float32)

    # Deterministic synthetic parameters in torch layouts.
    conv1_w = jax.random.normal(ks[1], (out_channels, in_channels, 3, 3),
                                jnp.float32) * 0.1
    conv2_w = jax.random.normal(ks[2], (out_channels, out_channels, 3, 3),
                                jnp.float32) * 0.1
    down_w = jax.random.normal(ks[3], (out_channels, in_channels, 1, 1),
                               jnp.float32) * 0.1
    fc1_w = jax.random.normal(ks[4], (HID, D), jnp.float32) * 0.02   # torch (out, in)
    fc1_b = jax.random.normal(ks[5], (HID,), jnp.float32) * 0.02
    fc2_w = jax.random.normal(ks[6], (D, HID), jnp.float32) * 0.02   # torch (out, in)
    fc2_b = jax.random.normal(ks[7], (D,), jnp.float32) * 0.02

    params = dict(
        conv1_w=conv1_w, conv2_w=conv2_w, down_w=down_w,
        fc1_wT=fc1_w.T, fc1_b=fc1_b.reshape(1, HID),     # (D, HID) for x @ W^T
        fc2_wT=fc2_w.T, fc2_b=fc2_b.reshape(1, D),       # (HID, D)
    )

    fwd = jax.jit(feature_extract_block_forward)
    out = jax.block_until_ready(fwd(x, params))
    assert out.shape == (B, out_channels, window_size, feature_num), out.shape
    assert bool(jnp.all(jnp.isfinite(out)))

    # Loose logic check vs a pure-JAX reference: tolerance is wide enough to be
    # immune to MXU/XLA f32 rounding differences but catches any layout/shift bug.
    ref = _reference_forward(x, params)
    max_diff = float(jnp.max(jnp.abs(out - ref)))
    assert max_diff < 5e-2, f"mismatch vs reference: max|diff|={max_diff}"

    print("KERNEL_OK")
</pallas_src>

<mosaic_0001>
module attributes {stable_mosaic.version = 11 : i64} {
  func.func @_fused_kernel(%arg0: memref<2x1024xf32, #tpu.memory_space<vmem>>, %arg1: memref<8x8xf32, #tpu.memory_space<vmem>>, %arg2: memref<1024x64xf32, #tpu.memory_space<vmem>>, %arg3: memref<1x64xf32, #tpu.memory_space<vmem>>, %arg4: memref<64x1024xf32, #tpu.memory_space<vmem>>, %arg5: memref<1x1024xf32, #tpu.memory_space<vmem>>, %arg6: memref<8x72xf32, #tpu.memory_space<vmem>>, %arg7: memref<8x72xf32, #tpu.memory_space<vmem>>, %arg8: memref<9x256xf32, #tpu.memory_space<vmem>>, %arg9: memref<8x256xf32, #tpu.memory_space<vmem>>, %arg10: memref<8x512xf32, #tpu.memory_space<vmem>>, %arg11: memref<72x256xf32, #tpu.memory_space<vmem>>) attributes {dimension_semantics = [], scalar_prefetch = 0 : i64, scratch_operands = 2 : i64, tpu.core_type = #tpu.core_type<tc>} {
    %c0 = arith.constant 0 : index
    %c0_0 = arith.constant 0 : index
    %0 = vector.load %arg0[%c0, %c0_0] : memref<2x1024xf32, #tpu.memory_space<vmem>>, vector<2x1024xf32>
    %cst = arith.constant 0.000000e+00 : f32
    %1 = vector.broadcast %cst : f32 to vector<8x512xf32>
    %c0_1 = arith.constant 0 : index
    %c0_2 = arith.constant 0 : index
    %2 = vector.load %arg10[%c0_1, %c0_2] : memref<8x512xf32, #tpu.memory_space<vmem>>, vector<8x512xf32>
    tpu.vector_store %arg10[%c0_1, %c0_2], %1 {strides = array<i32>} : memref<8x512xf32, #tpu.memory_space<vmem>>, vector<8x512xf32>,
    %3 = vector.extract_strided_slice %0 {offsets = [0, 0], sizes = [2, 256], strides = [1, 1]} : vector<2x1024xf32> to vector<2x256xf32>
    %c0_3 = arith.constant 0 : index
    %c128 = arith.constant 128 : index
    %4 = vector.load %arg10[%c0_3, %c128] : memref<8x512xf32, #tpu.memory_space<vmem>>, vector<2x256xf32>
    tpu.vector_store %arg10[%c0_3, %c128], %3 {strides = array<i32>} : memref<8x512xf32, #tpu.memory_space<vmem>>, vector<2x256xf32>,
    %5 = vector.extract_strided_slice %0 {offsets = [0, 256], sizes = [2, 256], strides = [1, 1]} : vector<2x1024xf32> to vector<2x256xf32>
    %c2 = arith.constant 2 : index
    %c128_4 = arith.constant 128 : index
    %6 = vector.load %arg10[%c2, %c128_4] : memref<8x512xf32, #tpu.memory_space<vmem>>, vector<2x256xf32>
    tpu.vector_store %arg10[%c2, %c128_4], %5 {strides = array<i32>} : memref<8x512xf32, #tpu.memory_space<vmem>>, vector<2x256xf32>,
    %7 = vector.extract_strided_slice %0 {offsets = [0, 512], sizes = [2, 256], strides = [1, 1]} : vector<2x1024xf32> to vector<2x256xf32>
    %c4 = arith.constant 4 : index
    %c128_5 = arith.constant 128 : index
    %8 = vector.load %arg10[%c4, %c128_5] : memref<8x512xf32, #tpu.memory_space<vmem>>, vector<2x256xf32>
    tpu.vector_store %arg10[%c4, %c128_5], %7 {strides = array<i32>} : memref<8x512xf32, #tpu.memory_space<vmem>>, vector<2x256xf32>,
    %9 = vector.extract_strided_slice %0 {offsets = [0, 768], sizes = [2, 256], strides = [1, 1]} : vector<2x1024xf32> to vector<2x256xf32>
    %c6 = arith.constant 6 : index
    %c128_6 = arith.constant 128 : index
    %10 = vector.load %arg10[%c6, %c128_6] : memref<8x512xf32, #tpu.memory_space<vmem>>, vector<2x256xf32>
    tpu.vector_store %arg10[%c6, %c128_6], %9 {strides = array<i32>} : memref<8x512xf32, #tpu.memory_space<vmem>>, vector<2x256xf32>,
    %c0_7 = arith.constant 0 : index
    %c128_8 = arith.constant 128 : index
    %11 = vector.load %arg10[%c0_7, %c128_8] : memref<8x512xf32, #tpu.memory_space<vmem>>, vector<8x256xf32>
    %c0_9 = arith.constant 0 : index
    %c0_10 = arith.constant 0 : index
    %12 = vector.load %arg1[%c0_9, %c0_10] : memref<8x8xf32, #tpu.memory_space<vmem>>, vector<8x8xf32>
    %cst_11 = arith.constant dense<0.000000e+00> : vector<8x256xf32>
    %13 = tpu.matmul %12, %11, %cst_11 {dimension_numbers = #tpu.dot_dimension_numbers<[1], [0], [0], [1], [0, 0, 1, 1], [], []>} : vector<8x8xf32>, vector<8x256xf32>, vector<8x256xf32> -> vector<8x256xf32>
    %cst_12 = arith.constant dense<0x7F800000> : vector<8xf32>
    %14 = vector.multi_reduction <minimumf>, %13, %cst_12 [1] : vector<8x256xf32> to vector<8xf32>
    %15 = vector.shape_cast %14 : vector<8xf32> to vector<8x1xf32>
    %cst_13 = arith.constant dense<0xFF800000> : vector<8xf32>
    %16 = vector.multi_reduction <maximumf>, %13, %cst_13 [1] : vector<8x256xf32> to vector<8xf32>
    %17 = vector.shape_cast %16 : vector<8xf32> to vector<8x1xf32>
    %18 = vector.broadcast %15 : vector<8x1xf32> to vector<8x256xf32>
    %19 = arith.subf %13, %18 : vector<8x256xf32>
    %20 = arith.subf %17, %15 : vector<8x1xf32>
    %cst_14 = arith.constant 9.99999993E-9 : f32
    %21 = vector.broadcast %cst_14 : f32 to vector<8x1xf32>
    %22 = arith.addf %20, %21 : vector<8x1xf32>
    %23 = tpu.reciprocal %22 : vector<8x1xf32> -> vector<8x1xf32>
    %24 = vector.broadcast %23 : vector<8x1xf32> to vector<8x256xf32>
    %25 = arith.mulf %19, %24 : vector<8x256xf32>
    %c0_15 = arith.constant 0 : index
    %c0_16 = arith.constant 0 : index
    %26 = vector.load %arg2[%c0_15, %c0_16] : memref<1024x64xf32, #tpu.memory_space<vmem>>, vector<1024x64xf32>
    %cst_17 = arith.constant dense<0.000000e+00> : vector<2x64xf32>
    %27 = tpu.matmul %0, %26, %cst_17 {dimension_numbers = #tpu.dot_dimension_numbers<[1], [0], [0], [1], [0, 0, 1, 1], [], []>} : vector<2x1024xf32>, vector<1024x64xf32>, vector<2x64xf32> -> vector<2x64xf32>
    %c0_18 = arith.constant 0 : index
    %c0_19 = arith.constant 0 : index
    %28 = vector.load %arg3[%c0_18, %c0_19] : memref<1x64xf32, #tpu.memory_space<vmem>>, vector<1x64xf32>
    %29 = vector.broadcast %28 : vector<1x64xf32> to vector<2x64xf32>
    %30 = arith.addf %27, %29 : vector<2x64xf32>
    %c0_20 = arith.constant 0 : index
    %c0_21 = arith.constant 0 : index
    %31 = vector.load %arg4[%c0_20, %c0_21] : memref<64x1024xf32, #tpu.memory_space<vmem>>, vector<64x256xf32>
    %cst_22 = arith.constant dense<0.000000e+00> : vector<2x256xf32>
    %32 = tpu.matmul %30, %31, %cst_22 {dimension_numbers = #tpu.dot_dimension_numbers<[1], [0], [0], [1], [0, 0, 1, 1], [], []>} : vector<2x64xf32>, vector<64x256xf32>, vector<2x256xf32> -> vector<2x256xf32>
    %c0_23 = arith.constant 0 : index
    %c0_24 = arith.constant 0 : index
    %33 = vector.load %arg5[%c0_23, %c0_24] : memref<1x1024xf32, #tpu.memory_space<vmem>>, vector<1x256xf32>
    %34 = vector.broadcast %33 : vector<1x256xf32> to vector<2x256xf32>
    %35 = arith.addf %32, %34 : vector<2x256xf32>
    %c0_25 = arith.constant 0 : index
    %c128_26 = arith.constant 128 : index
    %36 = vector.load %arg10[%c0_25, %c128_26] : memref<8x512xf32, #tpu.memory_space<vmem>>, vector<2x256xf32>
    tpu.vector_store %arg10[%c0_25, %c128_26], %35 {strides = array<i32>} : memref<8x512xf32, #tpu.memory_space<vmem>>, vector<2x256xf32>,
    %c0_27 = arith.constant 0 : index
    %c256 = arith.constant 256 : index
    %37 = vector.load %arg4[%c0_27, %c256] : memref<64x1024xf32, #tpu.memory_space<vmem>>, vector<64x256xf32>
    %cst_28 = arith.constant dense<0.000000e+00> : vector<2x256xf32>
    %38 = tpu.matmul %30, %37, %cst_28 {dimension_numbers = #tpu.dot_dimension_numbers<[1], [0], [0], [1], [0, 0, 1, 1], [], []>} : vector<2x64xf32>, vector<64x256xf32>, vector<2x256xf32> -> vector<2x256xf32>
    %c0_29 = arith.constant 0 : index
    %c256_30 = arith.constant 256 : index
    %39 = vector.load %arg5[%c0_29, %c256_30] : memref<1x1024xf32, #tpu.memory_space<vmem>>, vector<1x256xf32>
    %40 = vector.broadcast %39 : vector<1x256xf32> to vector<2x256xf32>
    %41 = arith.addf %38, %40 : vector<2x256xf32>
    %c2_31 = arith.constant 2 : index
    %c128_32 = arith.constant 128 : index
    %42 = vector.load %arg10[%c2_31, %c128_32] : memref<8x512xf32, #tpu.memory_space<vmem>>, vector<2x256xf32>
    tpu.vector_store %arg10[%c2_31, %c128_32], %41 {strides = array<i32>} : memref<8x512xf32, #tpu.memory_space<vmem>>, vector<2x256xf32>,
    %c0_33 = arith.constant 0 : index
    %c512 = arith.constant 512 : index
    %43 = vector.load %arg4[%c0_33, %c512] : memref<64x1024xf32, #tpu.memory_space<vmem>>, vector<64x256xf32>
    %cst_34 = arith.constant dense<0.000000e+00> : vector<2x256xf32>
    %44 = tpu.matmul %30, %43, %cst_34 {dimension_numbers = #tpu.dot_dimension_numbers<[1], [0], [0], [1], [0, 0, 1, 1], [], []>} : vector<2x64xf32>, vector<64x256xf32>, vector<2x256xf32> -> vector<2x256xf32>
    %c0_35 = arith.constant 0 : index
    %c512_36 = arith.constant 512 : index
    %45 = vector.load %arg5[%c0_35, %c512_36] : memref<1x1024xf32, #tpu.memory_space<vmem>>, vector<1x256xf32>
    %46 = vector.broadcast %45 : vector<1x256xf32> to vector<2x256xf32>
    %47 = arith.addf %44, %46 : vector<2x256xf32>
    %c4_37 = arith.constant 4 : index
    %c128_38 = arith.constant 128 : index
    %48 = vector.load %arg10[%c4_37, %c128_38] : memref<8x512xf32, #tpu.memory_space<vmem>>, vector<2x256xf32>
    tpu.vector_store %arg10[%c4_37, %c128_38], %47 {strides = array<i32>} : memref<8x512xf32, #tpu.memory_space<vmem>>, vector<2x256xf32>,
    %c0_39 = arith.constant 0 : index
    %c768 = arith.constant 768 : index
    %49 = vector.load %arg4[%c0_39, %c768] : memref<64x1024xf32, #tpu.memory_space<vmem>>, vector<64x256xf32>
    %cst_40 = arith.constant dense<0.000000e+00> : vector<2x256xf32>
    %50 = tpu.matmul %30, %49, %cst_40 {dimension_numbers = #tpu.dot_dimension_numbers<[1], [0], [0], [1], [0, 0, 1, 1], [], []>} : vector<2x64xf32>, vector<64x256xf32>, vector<2x256xf32> -> vector<2x256xf32>
    %c0_41 = arith.constant 0 : index
    %c768_42 = arith.constant 768 : index
    %51 = vector.load %arg5[%c0_41, %c768_42] : memref<1x1024xf32, #tpu.memory_space<vmem>>, vector<1x256xf32>
    %52 = vector.broadcast %51 : vector<1x256xf32> to vector<2x256xf32>
    %53 = arith.addf %50, %52 : vector<2x256xf32>
    %c6_43 = arith.constant 6 : index
    %c128_44 = arith.constant 128 : index
    %54 = vector.load %arg10[%c6_43, %c128_44] : memref<8x512xf32, #tpu.memory_space<vmem>>, vector<2x256xf32>
    tpu.vector_store %arg10[%c6_43, %c128_44], %53 {strides = array<i32>} : memref<8x512xf32, #tpu.memory_space<vmem>>, vector<2x256xf32>,
    %c0_45 = arith.constant 0 : index
    %c0_46 = arith.constant 0 : index
    %55 = vector.load %arg10[%c0_45, %c0_46] : memref<8x512xf32, #tpu.memory_space<vmem>>, vector<8x512xf32>
    %56 = vector.extract_strided_slice %55 {offsets = [0, 111], sizes = [8, 256], strides = [1, 1]} : vector<8x512xf32> to vector<8x256xf32>
    %c0_47 = arith.constant 0 : index
    %c0_48 = arith.constant 0 : index
    %57 = vector.load %arg8[%c0_47, %c0_48] : memref<9x256xf32, #tpu.memory_space<vmem>>, vector<1x256xf32>
    %58 = vector.broadcast %57 : vector<1x256xf32> to vector<8x256xf32>
    %59 = arith.mulf %56, %58 : vector<8x256xf32>
    %c0_49 = arith.constant 0 : index
    %c0_50 = arith.constant 0 : index
    %60 = vector.load %arg11[%c0_49, %c0_50] : memref<72x256xf32, #tpu.memory_space<vmem>>, vector<8x256xf32>
    tpu.vector_store %arg11[%c0_49, %c0_50], %59 {strides = array<i32>} : memref<72x256xf32, #tpu.memory_space<vmem>>, vector<8x256xf32>,
    %61 = vector.extract_strided_slice %55 {offsets = [0, 112], sizes = [8, 256], strides = [1, 1]} : vector<8x512xf32> to vector<8x256xf32>
    %c1 = arith.constant 1 : index
    %c0_51 = arith.constant 0 : index
    %62 = vector.load %arg8[%c1, %c0_51] : memref<9x256xf32, #tpu.memory_space<vmem>>, vector<1x256xf32>
    %63 = vector.broadcast %62 : vector<1x256xf32> to vector<8x256xf32>
    %64 = arith.mulf %61, %63 : vector<8x256xf32>
    %c8 = arith.constant 8 : index
    %c0_52 = arith.constant 0 : index
    %65 = vector.load %arg11[%c8, %c0_52] : memref<72x256xf32, #tpu.memory_space<vmem>>, vector<8x256xf32>
    tpu.vector_store %arg11[%c8, %c0_52], %64 {strides = array<i32>} : memref<72x256xf32, #tpu.memory_space<vmem>>, vector<8x256xf32>,
    %66 = vector.extract_strided_slice %55 {offsets = [0, 113], sizes = [8, 256], strides = [1, 1]} : vector<8x512xf32> to vector<8x256xf32>
    %c2_53 = arith.constant 2 : index
    %c0_54 = arith.constant 0 : index
    %67 = vector.load %arg8[%c2_53, %c0_54] : memref<9x256xf32, #tpu.memory_space<vmem>>, vector<1x256xf32>
    %68 = vector.broadcast %67 : vector<1x256xf32> to vector<8x256xf32>
    %69 = arith.mulf %66, %68 : vector<8x256xf32>
    %c16 = arith.constant 16 : index
    %c0_55 = arith.constant 0 : index
    %70 = vector.load %arg11[%c16, %c0_55] : memref<72x256xf32, #tpu.memory_space<vmem>>, vector<8x256xf32>
    tpu.vector_store %arg11[%c16, %c0_55], %69 {strides = array<i32>} : memref<72x256xf32, #tpu.memory_space<vmem>>, vector<8x256xf32>,
    %71 = vector.extract_strided_slice %55 {offsets = [0, 127], sizes = [8, 256], strides = [1, 1]} : vector<8x512xf32> to vector<8x256xf32>
    %c3 = arith.constant 3 : index
    %c0_56 = arith.constant 0 : index
    %72 = vector.load %arg8[%c3, %c0_56] : memref<9x256xf32, #tpu.memory_space<vmem>>, vector<1x256xf32>
    %73 = vector.broadcast %72 : vector<1x256xf32> to vector<8x256xf32>
    %74 = arith.mulf %71, %73 : vector<8x256xf32>
    %c24 = arith.constant 24 : index
    %c0_57 = arith.constant 0 : index
    %75 = vector.load %arg11[%c24, %c0_57] : memref<72x256xf32, #tpu.memory_space<vmem>>, vector<8x256xf32>
    tpu.vector_store %arg11[%c24, %c0_57], %74 {strides = array<i32>} : memref<72x256xf32, #tpu.memory_space<vmem>>, vector<8x256xf32>,
    %76 = vector.extract_strided_slice %55 {offsets = [0, 128], sizes = [8, 256], strides = [1, 1]} : vector<8x512xf32> to vector<8x256xf32>
    %c4_58 = arith.constant 4 : index
    %c0_59 = arith.constant 0 : index
    %77 = vector.load %arg8[%c4_58, %c0_59] : memref<9x256xf32, #tpu.memory_space<vmem>>, vector<1x256xf32>
    %78 = vector.broadcast %77 : vector<1x256xf32> to vector<8x256xf32>
    %79 = arith.mulf %76, %78 : vector<8x256xf32>
    %c32 = arith.constant 32 : index
    %c0_60 = arith.constant 0 : index
    %80 = vector.load %arg11[%c32, %c0_60] : memref<72x256xf32, #tpu.memory_space<vmem>>, vector<8x256xf32>
    tpu.vector_store %arg11[%c32, %c0_60], %79 {strides = array<i32>} : memref<72x256xf32, #tpu.memory_space<vmem>>, vector<8x256xf32>,
    %81 = vector.extract_strided_slice %55 {offsets = [0, 129], sizes = [8, 256], strides = [1, 1]} : vector<8x512xf32> to vector<8x256xf32>
    %c5 = arith.constant 5 : index
    %c0_61 = arith.constant 0 : index
    %82 = vector.load %arg8[%c5, %c0_61] : memref<9x256xf32, #tpu.memory_space<vmem>>, vector<1x256xf32>
    %83 = vector.broadcast %82 : vector<1x256xf32> to vector<8x256xf32>
    %84 = arith.mulf %81, %83 : vector<8x256xf32>
    %c40 = arith.constant 40 : index
    %c0_62 = arith.constant 0 : index
    %85 = vector.load %arg11[%c40, %c0_62] : memref<72x256xf32, #tpu.memory_space<vmem>>, vector<8x256xf32>
    tpu.vector_store %arg11[%c40, %c0_62], %84 {strides = array<i32>} : memref<72x256xf32, #tpu.memory_space<vmem>>, vector<8x256xf32>,
    %86 = vector.extract_strided_slice %55 {offsets = [0, 143], sizes = [8, 256], strides = [1, 1]} : vector<8x512xf32> to vector<8x256xf32>
    %c6_63 = arith.constant 6 : index
    %c0_64 = arith.constant 0 : index
    %87 = vector.load %arg8[%c6_63, %c0_64] : memref<9x256xf32, #tpu.memory_space<vmem>>, vector<1x256xf32>
    %88 = vector.broadcast %87 : vector<1x256xf32> to vector<8x256xf32>
    %89 = arith.mulf %86, %88 : vector<8x256xf32>
    %c48 = arith.constant 48 : index
    %c0_65 = arith.constant 0 : index
    %90 = vector.load %arg11[%c48, %c0_65] : memref<72x256xf32, #tpu.memory_space<vmem>>, vector<8x256xf32>
    tpu.vector_store %arg11[%c48, %c0_65], %89 {strides = array<i32>} : memref<72x256xf32, #tpu.memory_space<vmem>>, vector<8x256xf32>,
    %91 = vector.extract_strided_slice %55 {offsets = [0, 144], sizes = [8, 256], strides = [1, 1]} : vector<8x512xf32> to vector<8x256xf32>
    %c7 = arith.constant 7 : index
    %c0_66 = arith.constant 0 : index
    %92 = vector.load %arg8[%c7, %c0_66] : memref<9x256xf32, #tpu.memory_space<vmem>>, vector<1x256xf32>
    %93 = vector.broadcast %92 : vector<1x256xf32> to vector<8x256xf32>
    %94 = arith.mulf %91, %93 : vector<8x256xf32>
    %c56 = arith.constant 56 : index
    %c0_67 = arith.constant 0 : index
    %95 = vector.load %arg11[%c56, %c0_67] : memref<72x256xf32, #tpu.memory_space<vmem>>, vector<8x256xf32>
    tpu.vector_store %arg11[%c56, %c0_67], %94 {strides = array<i32>} : memref<72x256xf32, #tpu.memory_space<vmem>>, vector<8x256xf32>,
    %96 = vector.extract_strided_slice %55 {offsets = [0, 145], sizes = [8, 256], strides = [1, 1]} : vector<8x512xf32> to vector<8x256xf32>
    %c8_68 = arith.constant 8 : index
    %c0_69 = arith.constant 0 : index
    %97 = vector.load %arg8[%c8_68, %c0_69] : memref<9x256xf32, #tpu.memory_space<vmem>>, vector<1x256xf32>
    %98 = vector.broadcast %97 : vector<1x256xf32> to vector<8x256xf32>
    %99 = arith.mulf %96, %98 : vector<8x256xf32>
    %c64 = arith.constant 64 : index
    %c0_70 = arith.constant 0 : index
    %100 = vector.load %arg11[%c64, %c0_70] : memref<72x256xf32, #tpu.memory_space<vmem>>, vector<8x256xf32>
    tpu.vector_store %arg11[%c64, %c0_70], %99 {strides = array<i32>} : memref<72x256xf32, #tpu.memory_space<vmem>>, vector<8x256xf32>,
    %c0_71 = arith.constant 0 : index
    %c0_72 = arith.constant 0 : index
    %101 = vector.load %arg11[%c0_71, %c0_72] : memref<72x256xf32, #tpu.memory_space<vmem>>, vector<72x256xf32>
    %c0_73 = arith.constant 0 : index
    %c0_74 = arith.constant 0 : index
    %102 = vector.load %arg6[%c0_73, %c0_74] : memref<8x72xf32, #tpu.memory_space<vmem>>, vector<8x72xf32>
    %cst_75 = arith.constant dense<0.000000e+00> : vector<8x256xf32>
    %103 = tpu.matmul %102, %101, %cst_75 {dimension_numbers = #tpu.dot_dimension_numbers<[1], [0], [0], [1], [0, 0, 1, 1], [], []>} : vector<8x72xf32>, vector<72x256xf32>, vector<8x256xf32> -> vector<8x256xf32>
    %cst_76 = arith.constant dense<0x7F800000> : vector<8xf32>
    %104 = vector.multi_reduction <minimumf>, %103, %cst_76 [1] : vector<8x256xf32> to vector<8xf32>
    %105 = vector.shape_cast %104 : vector<8xf32> to vector<8x1xf32>
    %cst_77 = arith.constant dense<0xFF800000> : vector<8xf32>
    %106 = vector.multi_reduction <maximumf>, %103, %cst_77 [1] : vector<8x256xf32> to vector<8xf32>
    %107 = vector.shape_cast %106 : vector<8xf32> to vector<8x1xf32>
    %108 = vector.broadcast %105 : vector<8x1xf32> to vector<8x256xf32>
    %109 = arith.subf %103, %108 : vector<8x256xf32>
    %110 = arith.subf %107, %105 : vector<8x1xf32>
    %cst_78 = arith.constant 9.99999993E-9 : f32
    %111 = vector.broadcast %cst_78 : f32 to vector<8x1xf32>
    %112 = arith.addf %110, %111 : vector<8x1xf32>
    %113 = tpu.reciprocal %112 : vector<8x1xf32> -> vector<8x1xf32>
    %114 = vector.broadcast %113 : vector<8x1xf32> to vector<8x256xf32>
    %115 = arith.mulf %109, %114 : vector<8x256xf32>
    %c0_79 = arith.constant 0 : index
    %c128_80 = arith.constant 128 : index
    %116 = vector.load %arg10[%c0_79, %c128_80] : memref<8x512xf32, #tpu.memory_space<vmem>>, vector<8x256xf32>
    tpu.vector_store %arg10[%c0_79, %c128_80], %115 {strides = array<i32>} : memref<8x512xf32, #tpu.memory_space<vmem>>, vector<8x256xf32>,
    %c0_81 = arith.constant 0 : index
    %c0_82 = arith.constant 0 : index
    %117 = vector.load %arg10[%c0_81, %c0_82] : memref<8x512xf32, #tpu.memory_space<vmem>>, vector<8x512xf32>
    %118 = vector.extract_strided_slice %117 {offsets = [0, 111], sizes = [8, 256], strides = [1, 1]} : vector<8x512xf32> to vector<8x256xf32>
    %c0_83 = arith.constant 0 : index
    %c0_84 = arith.constant 0 : index
    %119 = vector.load %arg8[%c0_83, %c0_84] : memref<9x256xf32, #tpu.memory_space<vmem>>, vector<1x256xf32>
    %120 = vector.broadcast %119 : vector<1x256xf32> to vector<8x256xf32>
    %121 = arith.mulf %118, %120 : vector<8x256xf32>
    %c0_85 = arith.constant 0 : index
    %c0_86 = arith.constant 0 : index
    %122 = vector.load %arg11[%c0_85, %c0_86] : memref<72x256xf32, #tpu.memory_space<vmem>>, vector<8x256xf32>
    tpu.vector_store %arg11[%c0_85, %c0_86], %121 {strides = array<i32>} : memref<72x256xf32, #tpu.memory_space<vmem>>, vector<8x256xf32>,
    %123 = vector.extract_strided_slice %117 {offsets = [0, 112], sizes = [8, 256], strides = [1, 1]} : vector<8x512xf32> to vector<8x256xf32>
    %c1_87 = arith.constant 1 : index
    %c0_88 = arith.constant 0 : index
    %124 = vector.load %arg8[%c1_87, %c0_88] : memref<9x256xf32, #tpu.memory_space<vmem>>, vector<1x256xf32>
    %125 = vector.broadcast %124 : vector<1x256xf32> to vector<8x256xf32>
    %126 = arith.mulf %123, %125 : vector<8x256xf32>
    %c8_89 = arith.constant 8 : index
    %c0_90 = arith.constant 0 : index
    %127 = vector.load %arg11[%c8_89, %c0_90] : memref<72x256xf32, #tpu.memory_space<vmem>>, vector<8x256xf32>
    tpu.vector_store %arg11[%c8_89, %c0_90], %126 {strides = array<i32>} : memref<72x256xf32, #tpu.memory_space<vmem>>, vector<8x256xf32>,
    %128 = vector.extract_strided_slice %117 {offsets = [0, 113], sizes = [8, 256], strides = [1, 1]} : vector<8x512xf32> to vector<8x256xf32>
    %c2_91 = arith.constant 2 : index
    %c0_92 = arith.constant 0 : index
    %129 = vector.load %arg8[%c2_91, %c0_92] : memref<9x256xf32, #tpu.memory_space<vmem>>, vector<1x256xf32>
    %130 = vector.broadcast %129 : vector<1x256xf32> to vector<8x256xf32>
    %131 = arith.mulf %128, %130 : vector<8x256xf32>
    %c16_93 = arith.constant 16 : index
    %c0_94 = arith.constant 0 : index
    %132 = vector.load %arg11[%c16_93, %c0_94] : memref<72x256xf32, #tpu.memory_space<vmem>>, vector<8x256xf32>
    tpu.vector_store %arg11[%c16_93, %c0_94], %131 {strides = array<i32>} : memref<72x256xf32, #tpu.memory_space<vmem>>, vector<8x256xf32>,
    %133 = vector.extract_strided_slice %117 {offsets = [0, 127], sizes = [8, 256], strides = [1, 1]} : vector<8x512xf32> to vector<8x256xf32>
    %c3_95 = arith.constant 3 : index
    %c0_96 = arith.constant 0 : index
    %134 = vector.load %arg8[%c3_95, %c0_96] : memref<9x256xf32, #tpu.memory_space<vmem>>, vector<1x256xf32>
    %135 = vector.broadcast %134 : vector<1x256xf32> to vector<8x256xf32>
    %136 = arith.mulf %133, %135 : vector<8x256xf32>
    %c24_97 = arith.constant 24 : index
    %c0_98 = arith.constant 0 : index
    %137 = vector.load %arg11[%c24_97, %c0_98] : memref<72x256xf32, #tpu.memory_space<vmem>>, vector<8x256xf32>
    tpu.vector_store %arg11[%c24_97, %c0_98], %136 {strides = array<i32>} : memref<72x256xf32, #tpu.memory_space<vmem>>, vector<8x256xf32>,
    %138 = vector.extract_strided_slice %117 {offsets = [0, 128], sizes = [8, 256], strides = [1, 1]} : vector<8x512xf32> to vector<8x256xf32>
    %c4_99 = arith.constant 4 : index
    %c0_100 = arith.constant 0 : index
    %139 = vector.load %arg8[%c4_99, %c0_100] : memref<9x256xf32, #tpu.memory_space<vmem>>, vector<1x256xf32>
    %140 = vector.broadcast %139 : vector<1x256xf32> to vector<8x256xf32>
    %141 = arith.mulf %138, %140 : vector<8x256xf32>
    %c32_101 = arith.constant 32 : index
    %c0_102 = arith.constant 0 : index
    %142 = vector.load %arg11[%c32_101, %c0_102] : memref<72x256xf32, #tpu.memory_space<vmem>>, vector<8x256xf32>
    tpu.vector_store %arg11[%c32_101, %c0_102], %141 {strides = array<i32>} : memref<72x256xf32, #tpu.memory_space<vmem>>, vector<8x256xf32>,
    %143 = vector.extract_strided_slice %117 {offsets = [0, 129], sizes = [8, 256], strides = [1, 1]} : vector<8x512xf32> to vector<8x256xf32>
    %c5_103 = arith.constant 5 : index
    %c0_104 = arith.constant 0 : index
    %144 = vector.load %arg8[%c5_103, %c0_104] : memref<9x256xf32, #tpu.memory_space<vmem>>, vector<1x256xf32>
    %145 = vector.broadcast %144 : vector<1x256xf32> to vector<8x256xf32>
    %146 = arith.mulf %143, %145 : vector<8x256xf32>
    %c40_105 = arith.constant 40 : index
    %c0_106 = arith.constant 0 : index
    %147 = vector.load %arg11[%c40_105, %c0_106] : memref<72x256xf32, #tpu.memory_space<vmem>>, vector<8x256xf32>
    tpu.vector_store %arg11[%c40_105, %c0_106], %146 {strides = array<i32>} : memref<72x256xf32, #tpu.memory_space<vmem>>, vector<8x256xf32>,
    %148 = vector.extract_strided_slice %117 {offsets = [0, 143], sizes = [8, 256], strides = [1, 1]} : vector<8x512xf32> to vector<8x256xf32>
    %c6_107 = arith.constant 6 : index
    %c0_108 = arith.constant 0 : index
    %149 = vector.load %arg8[%c6_107, %c0_108] : memref<9x256xf32, #tpu.memory_space<vmem>>, vector<1x256xf32>
    %150 = vector.broadcast %149 : vector<1x256xf32> to vector<8x256xf32>
    %151 = arith.mulf %148, %150 : vector<8x256xf32>
    %c48_109 = arith.constant 48 : index
    %c0_110 = arith.constant 0 : index
    %152 = vector.load %arg11[%c48_109, %c0_110] : memref<72x256xf32, #tpu.memory_space<vmem>>, vector<8x256xf32>
    tpu.vector_store %arg11[%c48_109, %c0_110], %151 {strides = array<i32>} : memref<72x256xf32, #tpu.memory_space<vmem>>, vector<8x256xf32>,
    %153 = vector.extract_strided_slice %117 {offsets = [0, 144], sizes = [8, 256], strides = [1, 1]} : vector<8x512xf32> to vector<8x256xf32>
    %c7_111 = arith.constant 7 : index
    %c0_112 = arith.constant 0 : index
    %154 = vector.load %arg8[%c7_111, %c0_112] : memref<9x256xf32, #tpu.memory_space<vmem>>, vector<1x256xf32>
    %155 = vector.broadcast %154 : vector<1x256xf32> to vector<8x256xf32>
    %156 = arith.mulf %153, %155 : vector<8x256xf32>
    %c56_113 = arith.constant 56 : index
    %c0_114 = arith.constant 0 : index
    %157 = vector.load %arg11[%c56_113, %c0_114] : memref<72x256xf32, #tpu.memory_space<vmem>>, vector<8x256xf32>
    tpu.vector_store %arg11[%c56_113, %c0_114], %156 {strides = array<i32>} : memref<72x256xf32, #tpu.memory_space<vmem>>, vector<8x256xf32>,
    %158 = vector.extract_strided_slice %117 {offsets = [0, 145], sizes = [8, 256], strides = [1, 1]} : vector<8x512xf32> to vector<8x256xf32>
    %c8_115 = arith.constant 8 : index
    %c0_116 = arith.constant 0 : index
    %159 = vector.load %arg8[%c8_115, %c0_116] : memref<9x256xf32, #tpu.memory_space<vmem>>, vector<1x256xf32>
    %160 = vector.broadcast %159 : vector<1x256xf32> to vector<8x256xf32>
    %161 = arith.mulf %158, %160 : vector<8x256xf32>
    %c64_117 = arith.constant 64 : index
    %c0_118 = arith.constant 0 : index
    %162 = vector.load %arg11[%c64_117, %c0_118] : memref<72x256xf32, #tpu.memory_space<vmem>>, vector<8x256xf32>
    tpu.vector_store %arg11[%c64_117, %c0_118], %161 {strides = array<i32>} : memref<72x256xf32, #tpu.memory_space<vmem>>, vector<8x256xf32>,
    %c0_119 = arith.constant 0 : index
    %c0_120 = arith.constant 0 : index
    %163 = vector.load %arg11[%c0_119, %c0_120] : memref<72x256xf32, #tpu.memory_space<vmem>>, vector<72x256xf32>
    %c0_121 = arith.constant 0 : index
    %c0_122 = arith.constant 0 : index
    %164 = vector.load %arg7[%c0_121, %c0_122] : memref<8x72xf32, #tpu.memory_space<vmem>>, vector<8x72xf32>
    %cst_123 = arith.constant dense<0.000000e+00> : vector<8x256xf32>
    %165 = tpu.matmul %164, %163, %cst_123 {dimension_numbers = #tpu.dot_dimension_numbers<[1], [0], [0], [1], [0, 0, 1, 1], [], []>} : vector<8x72xf32>, vector<72x256xf32>, vector<8x256xf32> -> vector<8x256xf32>
    %cst_124 = arith.constant dense<0x7F800000> : vector<8xf32>
    %166 = vector.multi_reduction <minimumf>, %165, %cst_124 [1] : vector<8x256xf32> to vector<8xf32>
    %167 = vector.shape_cast %166 : vector<8xf32> to vector<8x1xf32>
    %cst_125 = arith.constant dense<0xFF800000> : vector<8xf32>
    %168 = vector.multi_reduction <maximumf>, %165, %cst_125 [1] : vector<8x256xf32> to vector<8xf32>
    %169 = vector.shape_cast %168 : vector<8xf32> to vector<8x1xf32>
    %170 = vector.broadcast %167 : vector<8x1xf32> to vector<8x256xf32>
    %171 = arith.subf %165, %170 : vector<8x256xf32>
    %172 = arith.subf %169, %167 : vector<8x1xf32>
    %cst_126 = arith.constant 9.99999993E-9 : f32
    %173 = vector.broadcast %cst_126 : f32 to vector<8x1xf32>
    %174 = arith.addf %172, %173 : vector<8x1xf32>
    %175 = tpu.reciprocal %174 : vector<8x1xf32> -> vector<8x1xf32>
    %176 = vector.broadcast %175 : vector<8x1xf32> to vector<8x256xf32>
    %177 = arith.mulf %171, %176 : vector<8x256xf32>
    %178 = arith.addf %177, %25 : vector<8x256xf32>
    %c0_127 = arith.constant 0 : index
    %c0_128 = arith.constant 0 : index
    %179 = vector.load %arg9[%c0_127, %c0_128] : memref<8x256xf32, #tpu.memory_space<vmem>>, vector<8x256xf32>
    tpu.vector_store %arg9[%c0_127, %c0_128], %178 {strides = array<i32>} : memref<8x256xf32, #tpu.memory_space<vmem>>, vector<8x256xf32>,
    return
  }
}

</mosaic_0001>

<bundles_post_ra>
// kernel: feature_extract_block_forward.1
= control target key start
LH: loop header
LB: loop body
LE: loop exit
PB: predicated region body
PF: predicated region fallthrough
CT: control target
= control target key end

     0   :  { %v42_v0 = vlaneseq  ;;  %v2358_v4 = vmov 0.0   ;;  %v2359_v5 = vmov 1983009808   ;;  %vm71_vm0 = vcmask 64512   ;;  %s2360_s24 = smov 112   ;;  %s2361_s25 = smov 111   ;;  %s3410_s2 = inlined_call_operand.vmem [shape: f32[1024,64], index: 2, kind: input, shape index: {}]   ;;  %s3411_s0 = inlined_call_operand.vmem [shape: f32[2,1024], index: 0, kind: input, shape index: {}]   ;;  %s3412_s1 = inlined_call_operand.vmem [shape: f32[8,8], index: 1, kind: input, shape index: {}]   ;;  %s3413_s4 = inlined_call_operand.vmem [shape: f32[64,1024], index: 4, kind: input, shape index: {}]   ;;  %s3414_s8 = inlined_call_operand.vmem [shape: f32[9,256], index: 8, kind: input, shape index: {}]   ;;  %s3415_s3 = inlined_call_operand.vmem [shape: f32[1,64], index: 3, kind: input, shape index: {}]   ;;  %s3416_s5 = inlined_call_operand.vmem [shape: f32[1,1024], index: 5, kind: input, shape index: {}]   ;;  %s3417_s6 = inlined_call_operand.vmem [shape: f32[8,72], index: 6, kind: input, shape index: {}]   ;;  %s3418_s7 = inlined_call_operand.vmem [shape: f32[8,72], index: 7, kind: input, shape index: {}]   ;;  %s3419_s9 = inlined_call_operand.vmem [shape: f32[8,256], index: 9, kind: output, shape index: {}]  }
   0x1   :  { %v175_v1 = vld [vmem:[%s3410_s2 + $0x80] sm:$0xff]  ;;  %v176_v2 = vld [vmem:[%s3410_s2 + $0x88] sm:$0xff]  ;;  %36 = vst [vmem:[#allocation2 + $0x10] sm:$0xff] %v2358_v4  ;;  %v40_v6 = vunpack.c.l.s4 %v2359_v5  ;;  %34 = vst [vmem:[#allocation2] sm:$0xff] %v2358_v4  ;;  %139 = vmatprep.mubr.f32.mxu0 %v2358_v4  ;;  %s2362_s28 = smov 113   ;;  %s2363_s10 = smov 127  }
   0x2   :  { %v159_v3 = vld [vmem:[%s3410_s2] sm:$0xff]  ;;  %35 = vst [vmem:[#allocation2 + $0x8] sm:$0xff] %v2358_v4  ;;  %v2047_v7 = vpack.c.bf16 %v176_v2, %v175_v1  ;;  %v160_v8 = vld [vmem:[%s3410_s2 + $0x8] sm:$0xff]  ;;  %v177_v9 = vld [vmem:[%s3410_s2 + $0x90] sm:$0xff]  ;;  %v2440_v11 = vshrl.u32 %v42_v0, 7  ;;  %s2364_s13 = smov 1  }
   0x3   :  { %v178_v10 = vld [vmem:[%s3410_s2 + $0x98] sm:$0xff]  ;;  %v2049_v12 = vpack.c.bf16 %v160_v8, %v159_v3  ;;  %v161_v14 = vld [vmem:[%s3410_s2 + $0x10] sm:$0xff]  ;;  %v179_v16 = vld [vmem:[%s3410_s2 + $0xa0] sm:$0xff]  ;;  %v41_v17 = vunpack.c.0.s8 %v40_v6  ;;  %s2365_s16 = smov 15   ;;  %s2366_s19 = smov 16   ;;  %vm626_vm1 = vcmask 523264  }
   0x4   :  { %v2051_v13 = vpack.c.bf16 %v178_v10, %v177_v9  ;;  %v162_v15 = vld [vmem:[%s3410_s2 + $0x18] sm:$0xff]  ;;  %2048 = vmatprep.subr.bf16.mxu1 %v2047_v7  ;;  %v180_v18 = vld [vmem:[%s3410_s2 + $0xa8] sm:$0xff]  ;;  %v163_v20 = vld [vmem:[%s3410_s2 + $0x20] sm:$0xff]  ;;  %vm1081_vm2 = vcmask 916480   ;;  %vm1159_vm3 = vcmask 1039360   ;;  %vm1042_vm4 = vcmask 908288  }
   0x5   :  { %2050 = vmatpush3.bf16.msra.mxu1 %v2049_v12  ;;  %v2053_v19 = vpack.c.bf16 %v162_v15, %v161_v14  ;;  %v2458_v21 = vsub.s32 %v41_v17, %v2440_v11  ;;  %v2055_v22 = vpack.c.bf16 %v180_v18, %v179_v16  ;;  %v164_v23 = vld [vmem:[%s3410_s2 + $0x28] sm:$0xff]  ;;  %v32_v24 = vld [vmem:[%s3411_s0] sm:$0xff]  ;;  %v181_v26 = vld [vmem:[%s3410_s2 + $0xb0] sm:$0xff]  ;;  %vm1120_vm5 = vcmask 924672  }
   0x6   :  { %2052 = vmatprep.subr.bf16.mxu1 %v2051_v13  ;;  %v2469_v25 = vld [vmem:[%s3411_s0 + $0x8] sm:$0xff]  ;;  %v182_v27 = vld [vmem:[%s3410_s2 + $0xb8] sm:$0xff]  ;;  %1879 = vst.sshfl [vmem:[#allocation2 + $0x8] sm:$0x3 pattern:$0x76325410] %v32_v24  ;;  %v2057_v30 = vpack.c.bf16 %v164_v23, %v163_v20  ;;  %v294_v38 = vcombine.high %v32_v24, %v32_v24 }
   0x7   :  { %v2478_v28 = vrot.slane %v32_v24, %v2458_v21  ;;  %1881 = vst.sshfl [vmem:[#allocation2 + $0x10] sm:$0xc pattern:$0x76325410] %v2469_v25  ;;  %v2484_v29 = vrot.slane %v2469_v25, %v2458_v21  ;;  %v2059_v33 = vpack.c.bf16 %v182_v27, %v181_v26  ;;  %v165_v34 = vld [vmem:[%s3410_s2 + $0x30] sm:$0xff]  ;;  %v166_v35 = vld [vmem:[%s3410_s2 + $0x38] sm:$0xff] }
   0x8   :  { %1882 = vst.sshfl [vmem:[#allocation2 + $0x10] sm:$0xc0 pattern:$0x76325410] %v2469_v25  ;;  %v183_v36 = vld [vmem:[%s3410_s2 + $0xc0] sm:$0xff]  ;;  %v184_v37 = vld [vmem:[%s3410_s2 + $0xc8] sm:$0xff]  ;;  %v2061_v39 = vpack.c.bf16 %v166_v35, %v165_v34  ;;  %v2521_v47 = vrot.slane %v294_v38, %v2458_v21 }
   0x9   :  { %1880 = vst.sshfl [vmem:[#allocation2 + $0x8] sm:$0x30 pattern:$0x76325410] %v32_v24  ;;  %2054 = vmatpush3.bf16.msra.mxu1 %v2053_v19  ;;  %v46_v31 = vcombine.high %v2478_v28, %v2478_v28  ;;  %v61_v32 = vcombine.low %v2484_v29, %v2484_v29  ;;  %v2063_v40 = vpack.c.bf16 %v184_v37, %v183_v36  ;;  %v167_v41 = vld [vmem:[%s3410_s2 + $0x40] sm:$0xff]  ;;  %v168_v42 = vld [vmem:[%s3410_s2 + $0x48] sm:$0xff] }
   0xa   :  { %2056 = vmatprep.subr.bf16.mxu1 %v2055_v22  ;;  %v207_v43 = vld [vmem:[%s3410_s2 + $0x180] sm:$0xff]  ;;  %v208_v44 = vld [vmem:[%s3410_s2 + $0x188] sm:$0xff]  ;;  %v185_v45 = vld [vmem:[%s3410_s2 + $0xd0] sm:$0xff]  ;;  %v2065_v51 = vpack.c.bf16 %v168_v42, %v167_v41  ;;  %v302_v63 = vcombine.high %v2521_v47, %v2521_v47  ;;  %s2367_s0 = smov 17   ;;  %vm1098_vm6 = vcmask 130048   ;;  %vm1176_vm7 = vcmask 7168  }
   0xb   :  { %50 = vst [vmem:[#allocation2 + $0x10] sm:$0xf] %v46_v31   ;;  %64 = vst [vmem:[#allocation2 + $0x8] sm:$0xf0] %v61_v32   ;;  %382 = vmatprep.mubr.f32.mxu1 %v46_v31  ;;  %v186_v46 = vld [vmem:[%s3410_s2 + $0xd8] sm:$0xff]  ;;  %v70_v48 = vld [vmem:[%s3412_s1] sm:$0xff]  ;;  %v2079_v57 = vpack.c.bf16 %v208_v44, %v207_v43 }
   0xc   :  { %v191_v49 = vld [vmem:[%s3410_s2 + $0x100] sm:$0xff]  ;;  %v192_v50 = vld [vmem:[%s3410_s2 + $0x108] sm:$0xff]  ;;  %v169_v52 = vld [vmem:[%s3410_s2 + $0x50] sm:$0xff]  ;;  %v2067_v58 = vpack.c.bf16 %v186_v46, %v185_v45  ;;  %vm1137_vm8 = vcmask 121856   ;;  %vm1059_vm9 = vcmask 138240   ;;  %vm1367_vm10 = vcmask 588800  }
   0xd   :  { %2058 = vmatpush3.bf16.msra.mxu1 %v2057_v30  ;;  %v209_v53 = vld [vmem:[%s3410_s2 + $0x190] sm:$0xff]  ;;  %v210_v54 = vld [vmem:[%s3410_s2 + $0x198] sm:$0xff]  ;;  %v2081_v60 = vpack.c.bf16 %v192_v50, %v191_v49  ;;  %v187_v61 = vld [vmem:[%s3410_s2 + $0xe0] sm:$0xff]  ;;  %v311_v49 = vcombine.high %v2484_v29, %v2484_v29 }
   0xe   :  { %2060 = vmatprep.subr.bf16.mxu1 %v2059_v33  ;;  %v170_v59 = vld [vmem:[%s3410_s2 + $0x58] sm:$0xff]  ;;  %v188_v62 = vld [vmem:[%s3410_s2 + $0xe8] sm:$0xff]  ;;  %v2083_v0 = vpack.c.bf16 %v210_v54, %v209_v53  ;;  %v193_v1 = vld [vmem:[%s3410_s2 + $0x110] sm:$0xff] }
   0xf   :  { %v194_v2 = vld [vmem:[%s3410_s2 + $0x118] sm:$0xff]  ;;  %v2069_v3 = vpack.c.bf16 %v170_v59, %v169_v52  ;;  %v211_v5 = vld [vmem:[%s3410_s2 + $0x1a0] sm:$0xff]  ;;  %v212_v6 = vld [vmem:[%s3410_s2 + $0x1a8] sm:$0xff]  ;;  %v2071_v7 = vpack.c.bf16 %v188_v62, %v187_v61 }
  0x10   :  { %v171_v8 = vld [vmem:[%s3410_s2 + $0x60] sm:$0xff]  ;;  %v172_v9 = vld [vmem:[%s3410_s2 + $0x68] sm:$0xff]  ;;  %v2085_v10 = vpack.c.bf16 %v194_v2, %v193_v1  ;;  %v189_v12 = vld [vmem:[%s3410_s2 + $0xf0] sm:$0xff]  ;;  %v2087_v14 = vpack.c.bf16 %v212_v6, %v211_v5 }
  0x11   :  { %2062 = vmatpush3.bf16.msra.mxu1 %v2061_v39  ;;  %v190_v13 = vld [vmem:[%s3410_s2 + $0xf8] sm:$0xff]  ;;  %v195_v15 = vld [vmem:[%s3410_s2 + $0x120] sm:$0xff]  ;;  %v196_v16 = vld [vmem:[%s3410_s2 + $0x128] sm:$0xff]  ;;  %v2073_v17 = vpack.c.bf16 %v172_v9, %v171_v8 }
  0x12   :  { %v69_v55 = vld [vmem:[#allocation2 + $0x10] sm:$0xff]  ;;  %v68_v56 = vld [vmem:[#allocation2 + $0x8] sm:$0xff]  ;;  %2064 = vmatprep.subr.bf16.mxu1 %v2063_v40  ;;  %v214_v19 = vld [vmem:[%s3410_s2 + $0x1b8] sm:$0xff]  ;;  %v2075_v20 = vpack.c.bf16 %v190_v13, %v189_v12  ;;  %v2089_v24 = vpack.c.bf16 %v196_v16, %v195_v15 }
  0x13   :  { %75 = vmatprep.subr.mxu0 %v69_v55  ;;  %v213_v18 = vld [vmem:[%s3410_s2 + $0x1b0] sm:$0xff]  ;;  %v174_v23 = vld [vmem:[%s3410_s2 + $0x78] sm:$0xff]  ;;  %v239_v26 = vld [vmem:[%s3410_s2 + $0x280] sm:$0xff] }
  0x14   :  { %76 = vmatpush1.msra.mxu0 %v68_v56  ;;  %v173_v22 = vld [vmem:[%s3410_s2 + $0x70] sm:$0xff]  ;;  %v240_v27 = vld [vmem:[%s3410_s2 + $0x288] sm:$0xff]  ;;  %v2091_v30 = vpack.c.bf16 %v214_v19, %v213_v18  ;;  %v198_v32 = vld [vmem:[%s3410_s2 + $0x138] sm:$0xff] }
  0x15   :  { %1883 = vmatmul.mubr.msk.f32.vlgmr.msra.gmra.mrb[0].mxu0 %vm71_vm0, %v70_v48  ;;  %2066 = vmatpush3.bf16.msra.mxu1 %v2065_v51  ;;  %v197_v31 = vld [vmem:[%s3410_s2 + $0x130] sm:$0xff]  ;;  %v2077_v33 = vpack.c.bf16 %v174_v23, %v173_v22  ;;  %v215_v34 = vld [vmem:[%s3410_s2 + $0x1c0] sm:$0xff]  ;;  %v216_v35 = vld [vmem:[%s3410_s2 + $0x1c8] sm:$0xff]  ;;  %v2111_v36 = vpack.c.bf16 %v240_v27, %v239_v26 }
  0x16   :  { %2080 = vmatprep.subr.bf16.mxu0 %v2079_v57  ;;  %2068 = vmatprep.subr.bf16.mxu1 %v2067_v58  ;;  %v223_v37 = vld [vmem:[%s3410_s2 + $0x200] sm:$0xff]  ;;  %v224_v38 = vld [vmem:[%s3410_s2 + $0x208] sm:$0xff]  ;;  %v2093_v39 = vpack.c.bf16 %v198_v32, %v197_v31  ;;  %v241_v40 = vld [vmem:[%s3410_s2 + $0x290] sm:$0xff]  ;;  %v2095_v42 = vpack.c.bf16 %v216_v35, %v215_v34 }
  0x17   :  { %2082 = vmatpush3.bf16.msra.mxu0 %v2081_v60  ;;  %452 = vmatprep.mubr.f32.mxu0 %v302_v63  ;;  %v242_v41 = vld [vmem:[%s3410_s2 + $0x298] sm:$0xff]  ;;  %v199_v43 = vld [vmem:[%s3410_s2 + $0x140] sm:$0xff]  ;;  %v200_v44 = vld [vmem:[%s3410_s2 + $0x148] sm:$0xff]  ;;  %v2113_v45 = vpack.c.bf16 %v224_v38, %v223_v37 }
  0x18   :  { %2084 = vmatprep.subr.bf16.mxu0 %v2083_v0  ;;  %v217_v46 = vld [vmem:[%s3410_s2 + $0x1d0] sm:$0xff]  ;;  %v218_v48 = vld [vmem:[%s3410_s2 + $0x1d8] sm:$0xff]  ;;  %v2115_v50 = vpack.c.bf16 %v242_v41, %v241_v40  ;;  %v2097_v53 = vpack.c.bf16 %v200_v44, %v199_v43  ;;  %v243_v54 = vld [vmem:[%s3410_s2 + $0x2a0] sm:$0xff] }
  0x19   :  { %2070 = vmatpush3.bf16.msra.mxu1 %v2069_v3  ;;  %v225_v51 = vld [vmem:[%s3410_s2 + $0x210] sm:$0xff]  ;;  %v226_v52 = vld [vmem:[%s3410_s2 + $0x218] sm:$0xff]  ;;  %v244_v55 = vld [vmem:[%s3410_s2 + $0x2a8] sm:$0xff]  ;;  %v2099_v56 = vpack.c.bf16 %v218_v48, %v217_v46 }
  0x1a   :  { %2072 = vmatprep.subr.bf16.mxu1 %v2071_v7  ;;  %v201_v57 = vld [vmem:[%s3410_s2 + $0x150] sm:$0xff]  ;;  %v202_v58 = vld [vmem:[%s3410_s2 + $0x158] sm:$0xff]  ;;  %v2117_v59 = vpack.c.bf16 %v226_v52, %v225_v51  ;;  %v219_v60 = vld [vmem:[%s3410_s2 + $0x1e0] sm:$0xff]  ;;  %v2119_v61 = vpack.c.bf16 %v244_v55, %v243_v54 }
  0x1b   :  { %2086 = vmatpush3.bf16.msra.mxu0 %v2085_v10  ;;  %v227_v62 = vld [vmem:[%s3410_s2 + $0x220] sm:$0xff]  ;;  %v228_v63 = vld [vmem:[%s3410_s2 + $0x228] sm:$0xff]  ;;  %v2101_v0 = vpack.c.bf16 %v202_v58, %v201_v57  ;;  %v245_v1 = vld [vmem:[%s3410_s2 + $0x2b0] sm:$0xff] }
  0x1c   :  { %2088 = vmatprep.subr.bf16.mxu0 %v2087_v14  ;;  %v246_v2 = vld [vmem:[%s3410_s2 + $0x2b8] sm:$0xff]  ;;  %v203_v5 = vld [vmem:[%s3410_s2 + $0x160] sm:$0xff]  ;;  %v204_v6 = vld [vmem:[%s3410_s2 + $0x168] sm:$0xff]  ;;  %v2121_v7 = vpack.c.bf16 %v228_v63, %v227_v62 }
  0x1d   :  { %2074 = vmatpush3.bf16.msra.mxu1 %v2073_v17  ;;  %v221_v8 = vld [vmem:[%s3410_s2 + $0x1f0] sm:$0xff]  ;;  %v222_v9 = vld [vmem:[%s3410_s2 + $0x1f8] sm:$0xff]  ;;  %v2123_v10 = vpack.c.bf16 %v246_v2, %v245_v1  ;;  %v2105_v14 = vpack.c.bf16 %v204_v6, %v203_v5  ;;  %v247_v15 = vld [vmem:[%s3410_s2 + $0x2c0] sm:$0xff]  ;;  %v303_v17 = vcombine.high %v2469_v25, %v2469_v25 }
  0x1e   :  { %2076 = vmatprep.subr.bf16.mxu1 %v2075_v20  ;;  %v229_v12 = vld [vmem:[%s3410_s2 + $0x230] sm:$0xff]  ;;  %v230_v13 = vld [vmem:[%s3410_s2 + $0x238] sm:$0xff]  ;;  %v248_v16 = vld [vmem:[%s3410_s2 + $0x2c8] sm:$0xff]  ;;  %v2107_v18 = vpack.c.bf16 %v222_v9, %v221_v8 }
  0x1f   :  { %2090 = vmatpush3.bf16.msra.mxu0 %v2089_v24  ;;  %v205_v19 = vld [vmem:[%s3410_s2 + $0x170] sm:$0xff]  ;;  %v206_v20 = vld [vmem:[%s3410_s2 + $0x178] sm:$0xff]  ;;  %v2125_v22 = vpack.c.bf16 %v230_v13, %v229_v12  ;;  %v271_v23 = vld [vmem:[%s3410_s2 + $0x380] sm:$0xff]  ;;  %v2127_v24 = vpack.c.bf16 %v248_v16, %v247_v15 }
  0x20   :  { %2092 = vmatprep.subr.bf16.mxu0 %v2091_v30  ;;  %v272_v25 = vld [vmem:[%s3410_s2 + $0x388] sm:$0xff]  ;;  %v231_v26 = vld [vmem:[%s3410_s2 + $0x240] sm:$0xff]  ;;  %v2109_v30 = vpack.c.bf16 %v206_v20, %v205_v19  ;;  %v249_v31 = vld [vmem:[%s3410_s2 + $0x2d0] sm:$0xff] }
  0x21   :  { %2078 = vmatpush3.bf16.msra.mxu1 %v2077_v33  ;;  %v232_v27 = vld [vmem:[%s3410_s2 + $0x248] sm:$0xff]  ;;  %v250_v32 = vld [vmem:[%s3410_s2 + $0x2d8] sm:$0xff]  ;;  %v2726_v33 = vrot.slane %v303_v17, %v2458_v21  ;;  %v2143_v34 = vpack.c.bf16 %v272_v25, %v271_v23  ;;  %v255_v35 = vld [vmem:[%s3410_s2 + $0x300] sm:$0xff] }
  0x22   :  { %2112 = vmatprep.subr.bf16.mxu1 %v2111_v36  ;;  %v256_v36 = vld [vmem:[%s3410_s2 + $0x308] sm:$0xff]  ;;  %v2129_v37 = vpack.c.bf16 %v232_v27, %v231_v26  ;;  %v273_v38 = vld [vmem:[%s3410_s2 + $0x390] sm:$0xff]  ;;  %v274_v21 = vld [vmem:[%s3410_s2 + $0x398] sm:$0xff] }
  0x23   :  { %2094 = vmatpush3.bf16.msra.mxu0 %v2093_v39  ;;  %v2131_v39 = vpack.c.bf16 %v250_v32, %v249_v31  ;;  %v233_v40 = vld [vmem:[%s3410_s2 + $0x250] sm:$0xff]  ;;  %v234_v41 = vld [vmem:[%s3410_s2 + $0x258] sm:$0xff]  ;;  %v251_v43 = vld [vmem:[%s3410_s2 + $0x2e0] sm:$0xff]  ;;  %v2147_v46 = vpack.c.bf16 %v274_v21, %v273_v38 }
  0x24   :  { %383 = vmatmul.mubr.f32.vlgmr.msra.gmra.mrb[0].mxu1 %v2478_v28  ;;  %2096 = vmatprep.subr.bf16.mxu0 %v2095_v42  ;;  %v220_v28 = vld [vmem:[%s3410_s2 + $0x1e8] sm:$0xff]  ;;  %v2145_v42 = vpack.c.bf16 %v256_v36, %v255_v35  ;;  %v257_v48 = vld [vmem:[%s3410_s2 + $0x310] sm:$0xff]  ;;  %v275_v51 = vld [vmem:[%s3410_s2 + $0x3a0] sm:$0xff] }
  0x25   :  { %2114 = vmatpush3.bf16.msra.mxu1 %v2113_v45  ;;  %522 = vmatprep.mubr.f32.mxu1 %v311_v49  ;;  %v2103_v3 = vpack.c.bf16 %v220_v28, %v219_v60  ;;  %v252_v44 = vld [vmem:[%s3410_s2 + $0x2e8] sm:$0xff]  ;;  %v312_v45 = vcombine.high %v2726_v33, %v2726_v33  ;;  %v258_v49 = vld [vmem:[%s3410_s2 + $0x318] sm:$0xff]  ;;  %v235_v54 = vld [vmem:[%s3410_s2 + $0x260] sm:$0xff] }
  0x26   :  { %2116 = vmatprep.subr.bf16.mxu1 %v2115_v50  ;;  %v2133_v50 = vpack.c.bf16 %v234_v41, %v233_v40  ;;  %v276_v52 = vld [vmem:[%s3410_s2 + $0x3a8] sm:$0xff]  ;;  %v253_v57 = vld [vmem:[%s3410_s2 + $0x2f0] sm:$0xff]  ;;  %v278_v62 = vld [vmem:[%s3410_s2 + $0x3b8] sm:$0xff] }
  0x27   :  { %2098 = vmatpush3.bf16.msra.mxu0 %v2097_v53  ;;  %v2135_v53 = vpack.c.bf16 %v252_v44, %v251_v43  ;;  %v236_v55 = vld [vmem:[%s3410_s2 + $0x268] sm:$0xff]  ;;  %v2151_v58 = vpack.c.bf16 %v276_v52, %v275_v51  ;;  %v238_v1 = vld [vmem:[%s3410_s2 + $0x278] sm:$0xff]  ;;  %v261_v5 = vld [vmem:[%s3410_s2 + $0x330] sm:$0xff] }
  0x28   :  { %2100 = vmatprep.subr.bf16.mxu0 %v2099_v56  ;;  %v2149_v56 = vpack.c.bf16 %v258_v49, %v257_v48  ;;  %v260_v60 = vld [vmem:[%s3410_s2 + $0x328] sm:$0xff]  ;;  %v2137_v28 = vpack.c.bf16 %v236_v55, %v235_v54  ;;  %v262_v6 = vld [vmem:[%s3410_s2 + $0x338] sm:$0xff]  ;;  %v279_v8 = vld [vmem:[%s3410_s2 + $0x3c0] sm:$0xff] }
  0x29   :  { %2118 = vmatpush3.bf16.msra.mxu1 %v2117_v59  ;;  %v259_v59 = vld [vmem:[%s3410_s2 + $0x320] sm:$0xff]  ;;  %v280_v9 = vld [vmem:[%s3410_s2 + $0x3c8] sm:$0xff]  ;;  %v281_v15 = vld [vmem:[%s3410_s2 + $0x3d0] sm:$0xff] }
  0x2a   :  { %2120 = vmatprep.subr.bf16.mxu1 %v2119_v61  ;;  %v277_v61 = vld [vmem:[%s3410_s2 + $0x3b0] sm:$0xff]  ;;  %v2153_v2 = vpack.c.bf16 %v260_v60, %v259_v59  ;;  %v2159_v12 = vpack.c.bf16 %v280_v9, %v279_v8  ;;  %v263_v13 = vld [vmem:[%s3410_s2 + $0x340] sm:$0xff]  ;;  %v282_v16 = vld [vmem:[%s3410_s2 + $0x3d8] sm:$0xff] }
  0x2b   :  { %2102 = vmatpush3.bf16.msra.mxu0 %v2101_v0  ;;  %v237_v0 = vld [vmem:[%s3410_s2 + $0x270] sm:$0xff]  ;;  %v266_v20 = vld [vmem:[%s3410_s2 + $0x358] sm:$0xff]  ;;  %v284_v23 = vld [vmem:[%s3410_s2 + $0x3e8] sm:$0xff] }
  0x2c   :  { %2104 = vmatprep.subr.bf16.mxu0 %v2103_v3  ;;  %v2155_v3 = vpack.c.bf16 %v278_v62, %v277_v61  ;;  %v265_v19 = vld [vmem:[%s3410_s2 + $0x350] sm:$0xff]  ;;  %v268_v26 = vld [vmem:[%s3410_s2 + $0x368] sm:$0xff]  ;;  %v270_v35 = vld [vmem:[%s3410_s2 + $0x378] sm:$0xff] }
  0x2d   :  { %2122 = vmatpush3.bf16.msra.mxu1 %v2121_v7  ;;  %v2141_v7 = vpack.c.bf16 %v238_v1, %v237_v0  ;;  %v285_v27 = vld [vmem:[%s3410_s2 + $0x3f0] sm:$0xff]  ;;  %v601_v38 = vld [vmem:[%s3413_s4 + $0x48] sm:$0xff]  ;;  %v704_v21 = vld [vmem:[%s3413_s4 + $0x18] sm:$0xff] }
  0x2e   :  { %2124 = vmatprep.subr.bf16.mxu1 %v2123_v10  ;;  %v2157_v10 = vpack.c.bf16 %v262_v6, %v261_v5  ;;  %v706_v40 = vld [vmem:[%s3413_s4 + $0x58] sm:$0xff]  ;;  %v600_v41 = vld [vmem:[%s3413_s4 + $0x40] sm:$0xff]  ;;  %v703_v44 = vld [vmem:[%s3413_s4 + $0x10] sm:$0xff] }
  0x2f   :  { %2106 = vmatpush3.bf16.msra.mxu0 %v2105_v14  ;;  %v264_v14 = vld [vmem:[%s3410_s2 + $0x348] sm:$0xff]  ;;  %v710_v51 = vld [vmem:[%s3413_s4 + $0xd8] sm:$0xff]  ;;  %v602_v54 = vld [vmem:[%s3413_s4 + $0x80] sm:$0xff] }
  0x30   :  { %2108 = vmatprep.subr.bf16.mxu0 %v2107_v18  ;;  %v2161_v17 = vpack.c.bf16 %v264_v14, %v263_v13  ;;  %v2163_v18 = vpack.c.bf16 %v282_v16, %v281_v15  ;;  %v605_v49 = vld [vmem:[%s3413_s4 + $0xc8] sm:$0xff]  ;;  %v604_v55 = vld [vmem:[%s3413_s4 + $0xc0] sm:$0xff]  ;;  %v712_v61 = vld [vmem:[%s3413_s4 + $0x118] sm:$0xff] }
  0x31   :  { %2126 = vmatpush3.bf16.msra.mxu1 %v2125_v22  ;;  %v283_v22 = vld [vmem:[%s3410_s2 + $0x3e0] sm:$0xff]  ;;  %v609_v59 = vld [vmem:[%s3413_s4 + $0x148] sm:$0xff]  ;;  %v714_v62 = vld [vmem:[%s3413_s4 + $0x158] sm:$0xff] }
  0x32   :  { %2128 = vmatprep.subr.bf16.mxu1 %v2127_v24  ;;  %v2167_v25 = vpack.c.bf16 %v284_v23, %v283_v22  ;;  %v267_v24 = vld [vmem:[%s3410_s2 + $0x360] sm:$0xff]  ;;  %v2199_v0 = vpack.c.bf16 %v714_v62, %v712_v61  ;;  %v613_v8 = vld [vmem:[%s3413_s4 + $0x1c8] sm:$0xff]  ;;  %v716_v9 = vld [vmem:[%s3413_s4 + $0x198] sm:$0xff] }
  0x33   :  { %2110 = vmatpush3.bf16.msra.mxu0 %v2109_v30  ;;  %v286_v30 = vld [vmem:[%s3410_s2 + $0x3f8] sm:$0xff]  ;;  %v2169_v31 = vpack.c.bf16 %v268_v26, %v267_v24  ;;  %v608_v1 = vld [vmem:[%s3413_s4 + $0x140] sm:$0xff]  ;;  %v813_v22 = vld [vmem:[%s3413_s4 + $0x68] sm:$0xff]  ;;  %v2964_v26 = vsub.s32 0, %v2440_v11 }
  0x34   :  { %2144 = vmatprep.subr.bf16.mxu0 %v2143_v34  ;;  %v2171_v32 = vpack.c.bf16 %v286_v30, %v285_v27  ;;  %v269_v34 = vld [vmem:[%s3410_s2 + $0x370] sm:$0xff]  ;;  %v610_v13 = vld [vmem:[%s3413_s4 + $0x180] sm:$0xff]  ;;  %v918_v23 = vld [vmem:[%s3413_s4 + $0x38] sm:$0xff]  ;;  %v2967_v27 = vsub.s32 1, %v2440_v11 }
  0x35   :  { %2130 = vmatpush3.bf16.msra.mxu1 %v2129_v37  ;;  %v2173_v36 = vpack.c.bf16 %v270_v35, %v269_v34  ;;  %v599_v37 = vld [vmem:[%s3413_s4 + $0x8] sm:$0xff]  ;;  %v612_v14 = vld [vmem:[%s3413_s4 + $0x1c0] sm:$0xff] }
  0x36   :  { %453 = vmatmul.mubr.f32.vlgmr.msra.gmra.mrb[2].mxu0 %v2521_v47  ;;  %2132 = vmatprep.subr.bf16.mxu1 %v2131_v39  ;;  %v254_v47 = vld [vmem:[%s3410_s2 + $0x2f8] sm:$0xff]  ;;  %v2175_v39 = vpack.c.bf16 %v601_v38, %v599_v37  ;;  %v2189_v16 = vpack.c.bf16 %v612_v14, %v610_v13  ;;  %v1889_v30 = vld [vmem:[%s3414_s8 + $0x1] ss:$8 sm:$0x3] }
  0x37   :  { %2146 = vmatpush3.bf16.msra.mxu0 %v2145_v42  ;;  %592 = vmatprep.mubr.f32.mxu0 %v312_v45  ;;  %v2139_v63 = vpack.c.bf16 %v254_v47, %v253_v57  ;;  %v2191_v42 = vpack.c.bf16 %v706_v40, %v704_v21  ;;  %v705_v45 = vld [vmem:[%s3413_s4 + $0x50] sm:$0xff]  ;;  %v2181_v57 = vpack.c.bf16 %v604_v55, %v602_v54  ;;  %v1891_v21 = vld [vmem:[%s3414_s8 + $0x3] ss:$8 sm:$0x3]  ;;  %v922_v14 = vld [vmem:[%s3413_s4 + $0xb8] sm:$0xff] }
  0x38   :  { %2148 = vmatprep.subr.bf16.mxu0 %v2147_v46  ;;  %v603_v46 = vld [vmem:[%s3413_s4 + $0x88] sm:$0xff]  ;;  %v2193_v48 = vpack.c.bf16 %v705_v45, %v703_v44  ;;  %v709_v47 = vld [vmem:[%s3413_s4 + $0xd0] sm:$0xff]  ;;  %v1076_v35 = vrot.slane %v1889_v30, %v2967_v27  ;;  %v1150_v40 = vrot.slane %v1891_v21, %v2964_v26 }
  0x39   :  { %2134 = vmatpush3.bf16.msra.mxu1 %v2133_v50  ;;  %v708_v50 = vld [vmem:[%s3413_s4 + $0x98] sm:$0xff]  ;;  %v2179_v52 = vpack.c.bf16 %v605_v49, %v603_v46  ;;  %v1895_v46 = vld [vmem:[%s3414_s8 + $0x7] ss:$8 sm:$0x3] }
  0x3a   :  { %2136 = vmatprep.subr.bf16.mxu1 %v2135_v53  ;;  %v2195_v53 = vpack.c.bf16 %v710_v51, %v708_v50  ;;  %v1280_v49 = vrot.slane %v1895_v46, %v2964_v26  ;;  %v1896_v50 = vld [vmem:[%s3414_s8 + $0x10] ss:$8 sm:$0x3]  ;;  %v817_v13 = vld [vmem:[%s3413_s4 + $0xe8] sm:$0xff] }
  0x3b   :  { %2150 = vmatpush3.bf16.msra.mxu0 %v2149_v56  ;;  %v707_v56 = vld [vmem:[%s3413_s4 + $0x90] sm:$0xff]  ;;  %v1321_v51 = vrot.slane %v1896_v50, %v2967_v27 }
  0x3c   :  { %2152 = vmatprep.subr.bf16.mxu0 %v2151_v58  ;;  %v607_v58 = vld [vmem:[%s3413_s4 + $0x108] sm:$0xff]  ;;  %v2197_v60 = vpack.c.bf16 %v709_v47, %v707_v56 }
  0x3d   :  { %2138 = vmatpush3.bf16.msra.mxu1 %v2137_v28  ;;  %v2183_v28 = vpack.c.bf16 %v609_v59, %v607_v58  ;;  %v1884_v59 = vld [vmem:[%s3415_s3] ss:$0 sm:$0xff] }
  0x3e   :  { %2140 = vmatprep.subr.bf16.mxu1 %v2139_v63  ;;  %v606_v63 = vld [vmem:[%s3413_s4 + $0x100] sm:$0xff] }
  0x3f   :  { %2154 = vmatpush3.bf16.msra.mxu0 %v2153_v2  ;;  %v711_v2 = vld [vmem:[%s3413_s4 + $0x110] sm:$0xff]  ;;  %v2185_v5 = vpack.c.bf16 %v608_v1, %v606_v63 }
  0x40   :  { %2156 = vmatprep.subr.bf16.mxu0 %v2155_v3  ;;  %v713_v3 = vld [vmem:[%s3413_s4 + $0x150] sm:$0xff] }
  0x41   :  { %2142 = vmatpush3.bf16.msra.mxu1 %v2141_v7  ;;  %v2201_v6 = vpack.c.bf16 %v713_v3, %v711_v2  ;;  %v611_v7 = vld [vmem:[%s3413_s4 + $0x188] sm:$0xff] }
  0x42   :  { %2176 = vmatprep.subr.bf16.mxu1 %v2175_v39  ;;  %v1154_v39 = vrot.slane %v1891_v21, %v2967_v27 }
  0x43   :  { %2158 = vmatpush3.bf16.msra.mxu0 %v2157_v10  ;;  %v2187_v10 = vpack.c.bf16 %v613_v8, %v611_v7  ;;  %v917_v8 = vld [vmem:[%s3413_s4 + $0x30] sm:$0xff] }
  0x44   :  { %523 = vmatmul.mubr.f32.vlgmr.msra.gmra.mrb[2].mxu1 %v2484_v29  ;;  %2160 = vmatprep.subr.bf16.mxu0 %v2159_v12  ;;  %v2165_v29 = vpack.c.bf16 %v266_v20, %v265_v19  ;;  %v718_v12 = vld [vmem:[%s3413_s4 + $0x1d8] sm:$0xff]  ;;  %v811_v20 = vld [vmem:[%s3413_s4 + $0x28] sm:$0xff] }
  0x45   :  { %694 = vmatprep.mubr.f32.mxu1 %v2358_v4  ;;  %v2203_v15 = vpack.c.bf16 %v718_v12, %v716_v9  ;;  %v919_v9 = vld [vmem:[%s3413_s4 + $0x70] sm:$0xff] }
  0x47   :  { %2162 = vmatpush3.bf16.msra.mxu0 %v2161_v17  ;;  %v715_v17 = vld [vmem:[%s3413_s4 + $0x190] sm:$0xff] }
  0x48   :  { %2164 = vmatprep.subr.bf16.mxu0 %v2163_v18  ;;  %v717_v18 = vld [vmem:[%s3413_s4 + $0x1d0] sm:$0xff] }
  0x49   :  { %v2205_v19 = vpack.c.bf16 %v717_v18, %v715_v17  ;;  %v2225_v18 = vpack.c.bf16 %v919_v9, %v917_v8 }
  0x4b   :  { %2166 = vmatpush3.bf16.msra.mxu0 %v2165_v29  ;;  %v2207_v29 = vpack.c.bf16 %v813_v22, %v811_v20  ;;  %v816_v20 = vld [vmem:[%s3413_s4 + $0xe0] sm:$0xff] }
  0x4c   :  { %2168 = vmatprep.subr.bf16.mxu0 %v2167_v25  ;;  %v920_v25 = vld [vmem:[%s3413_s4 + $0x78] sm:$0xff] }
  0x4d   :  { %v2223_v24 = vpack.c.bf16 %v920_v25, %v918_v23  ;;  %v921_v25 = vld [vmem:[%s3413_s4 + $0xb0] sm:$0xff] }
  0x4f   :  { %2170 = vmatpush3.bf16.msra.mxu0 %v2169_v31  ;;  %v1028_v31 = vld [vmem:[%s3414_s8] ss:$8 sm:$0x3] }
  0x50   :  { %2172 = vmatprep.subr.bf16.mxu0 %v2171_v32  ;;  %v1072_v32 = vrot.slane %v1889_v30, %v2964_v26  ;;  %v1033_v34 = vrot.slane %v1028_v31, %v2964_v26  ;;  %v1037_v11 = vrot.slane %v1028_v31, %v2967_v27  ;;  %v819_v30 = vld [vmem:[%s3413_s4 + $0x128] sm:$0xff] }
  0x51   :  { %v821_v31 = vld [vmem:[%s3413_s4 + $0x168] sm:$0xff] }
  0x52   :  { %1077 = vrot.lane.b32.xlu1 %v1072_v32, %s2360_s24  ;;  %1038 = vrot.lane.b32.xlu0 %v1033_v34, %s2361_s25  ;;  %v926_v32 = vld [vmem:[%s3413_s4 + $0x138] sm:$0xff] }
  0x53   :  { %2174 = vmatpush3.bf16.msra.mxu0 %v2173_v36  ;;  %v1890_v36 = vld [vmem:[%s3414_s8 + $0x2] ss:$8 sm:$0x3]  ;;  %v928_v34 = vld [vmem:[%s3413_s4 + $0x178] sm:$0xff] }
  0x54   :  { %2192 = vmatprep.subr.bf16.mxu0 %v2191_v42  ;;  %v1115_v37 = vrot.slane %v1890_v36, %v2967_v27  ;;  %v1111_v38 = vrot.slane %v1890_v36, %v2964_v26  ;;  %v818_v36 = vld [vmem:[%s3413_s4 + $0x120] sm:$0xff]  ;;  %v2231_v21 = vpack.c.bf16 %v928_v34, %v926_v32 }
  0x56   :  { %593 = vmatmul.mubr.f32.vlgmr.msra.gmra.mrb[4].mxu0 %v2726_v33  ;;  %v598_v33 = vld [vmem:[%s3413_s4] sm:$0xff]  ;;  %1079 = vrot.lane.b32.xlu1 %v1076_v35, %s2360_s24 }
  0x57   :  { %795 = vmatprep.mubr.f32.mxu0 %v2358_v4  ;;  %v2177_v43 = vpack.c.bf16 %v600_v41, %v598_v33  ;;  %2194 = vmatpush1.bf16.msra.mxu0 %v2193_v48  ;;  %v1893_v33 = vld [vmem:[%s3414_s8 + $0x5] ss:$8 sm:$0x3]  ;;  %v1284_v48 = vrot.slane %v1895_v46, %v2967_v27 }
  0x58   :  { %2196 = vmatprep.subr.bf16.mxu0 %v2195_v53  ;;  %1040 = vrot.lane.b32.xlu0 %v1037_v11, %s2361_s25  ;;  %v1210_v41 = vrot.slane %v1893_v33, %v2967_v27  ;;  %v1206_v42 = vrot.slane %v1893_v33, %v2964_v26  ;;  %v823_v33 = vld [vmem:[%s3413_s4 + $0x1a8] sm:$0xff]  ;;  %v822_v46 = vld [vmem:[%s3413_s4 + $0x1a0] sm:$0xff] }
  0x59   :  { %2178 = vmatpush1.bf16.msra.mxu1 %v2177_v43  ;;  %v1894_v43 = vld [vmem:[%s3414_s8 + $0x6] ss:$8 sm:$0x3] }
  0x5a   :  { %2180 = vmatprep.subr.bf16.mxu1 %v2179_v52  ;;  %1118 = vrot.lane.b32.xlu1 %v1115_v37, %s2362_s28  ;;  %v1247_v44 = vrot.slane %v1894_v43, %v2967_v27  ;;  %v1243_v45 = vrot.slane %v1894_v43, %v2964_v26  ;;  %v1317_v52 = vrot.slane %v1896_v50, %v2964_v26  ;;  %v820_v37 = vld [vmem:[%s3413_s4 + $0x160] sm:$0xff]  ;;  %v932_v43 = vld [vmem:[%s3413_s4 + $0x1f8] sm:$0xff] }
  0x5b   :  { %2198 = vmatpush1.bf16.msra.mxu0 %v2197_v60  ;;  %v824_v50 = vld [vmem:[%s3413_s4 + $0x1e0] sm:$0xff] }
  0x5c   :  { %2200 = vmatprep.subr.bf16.mxu0 %v2199_v0  ;;  %1116 = vrot.lane.b32.xlu0 %v1111_v38, %s2362_s28  ;;  %v2215_v38 = vpack.c.bf16 %v821_v31, %v819_v30 }
  0x5d   :  { %2182 = vmatpush1.bf16.msra.mxu1 %v2181_v57 }
  0x5e   :  { %2184 = vmatprep.subr.bf16.mxu1 %v2183_v28  ;;  %1157 = vrot.lane.b32.xlu1 %v1154_v39, %s2363_s10  ;;  %v925_v39 = vld [vmem:[%s3413_s4 + $0x130] sm:$0xff] }
  0x5f   :  { %2202 = vmatpush1.bf16.msra.mxu0 %v2201_v6  ;;  %v812_v6 = vld [vmem:[%s3413_s4 + $0x60] sm:$0xff] }
  0x60   :  { %2204 = vmatprep.subr.bf16.mxu0 %v2203_v15  ;;  %1155 = vrot.lane.b32.xlu0 %v1150_v40, %s2363_s10  ;;  %v924_v15 = vld [vmem:[%s3413_s4 + $0xf8] sm:$0xff]  ;;  %v927_v40 = vld [vmem:[%s3413_s4 + $0x170] sm:$0xff] }
  0x61   :  { %2186 = vmatpush1.bf16.msra.mxu1 %v2185_v5  ;;  %v810_v5 = vld [vmem:[%s3413_s4 + $0x20] sm:$0xff] }
  0x62   :  { %2188 = vmatprep.subr.bf16.mxu1 %v2187_v10  ;;  %1213 = vrot.lane.b32.xlu1 %v1210_v41, %s2364_s13  ;;  %v815_v10 = vld [vmem:[%s3413_s4 + $0xa8] sm:$0xff]  ;;  %v2209_v17 = vpack.c.bf16 %v812_v6, %v810_v5 }
  0x63   :  { %2206 = vmatpush1.bf16.msra.mxu0 %v2205_v19  ;;  %v814_v19 = vld [vmem:[%s3413_s4 + $0xa0] sm:$0xff]  ;;  %v2211_v23 = vpack.c.bf16 %v817_v13, %v815_v10  ;;  %v825_v41 = vld [vmem:[%s3413_s4 + $0x1e8] sm:$0xff] }
  0x64   :  { %2224 = vmatprep.subr.bf16.mxu0 %v2223_v24  ;;  %1211 = vrot.lane.b32.xlu0 %v1206_v42, %s2364_s13  ;;  %v923_v24 = vld [vmem:[%s3413_s4 + $0xf0] sm:$0xff]  ;;  %v2213_v35 = vpack.c.bf16 %v816_v20, %v814_v19  ;;  %v930_v42 = vld [vmem:[%s3413_s4 + $0x1b8] sm:$0xff] }
  0x65   :  { %2190 = vmatpush1.bf16.msra.mxu1 %v2189_v16  ;;  %v2229_v11 = vpack.c.bf16 %v923_v24, %v921_v25 }
  0x66   :  { %2208 = vmatprep.subr.bf16.mxu1 %v2207_v29  ;;  %1250 = vrot.lane.b32.xlu1 %v1247_v44, %s2365_s16  ;;  %v2227_v29 = vpack.c.bf16 %v924_v15, %v922_v14  ;;  %v2217_v44 = vpack.c.bf16 %v820_v37, %v818_v36 }
  0x68   :  { %1248 = vrot.lane.b32.xlu0 %v1243_v45, %s2365_s16  ;;  %v2233_v45 = vpack.c.bf16 %v927_v40, %v925_v39 }
  0x6a   :  { %1287 = vrot.lane.b32.xlu1 %v1284_v48, %s2366_s19  ;;  %v2219_v48 = vpack.c.bf16 %v825_v41, %v823_v33 }
  0x6c   :  { %1285 = vrot.lane.b32.xlu0 %v1280_v49, %s2366_s19  ;;  %v2235_v49 = vpack.c.bf16 %v932_v43, %v930_v42 }
  0x6e   :  { %1324 = vrot.lane.b32.xlu1 %v1321_v51, %s2367_s0  ;;  %v931_v51 = vld [vmem:[%s3413_s4 + $0x1f0] sm:$0xff] }
  0x70   :  { %1322 = vrot.lane.b32.xlu0 %v1317_v52, %s2367_s0 }
  0xc4   :  { %v3124_v52 = vpop.permute.xlu1 %1077 }
  0xc8   :  { %v1080_v20 = vpop.permute.xlu1 %1079 }
  0xe8   :  { %v3025_v53 = vpop.f32.mrb[0].mxu0 }
  0xe9   :  { %v3027_v54 = vpop.f32.mrb[1].mxu0 }
  0xea   :  { %v146_v55 = vmin.f32 %v3025_v53, %v3027_v54  ;;  %v149_v56 = vmax.f32 %v3025_v53, %v3027_v54 }
  0xf7   :  { %v1939_v57 = vpop.f32.mrb[0].mxu1 }
  0xf8   :  { %v1940_v47 = vpop.f32.mrb[1].mxu1 }
  0xf9   :  { %v1941_v58 = vadd.f32 %v1940_v47, %v1939_v57  ;;  %v3126_v57 = vpop.permute.xlu0 %1038  ;;  %v1086_v47 = vmul.f32 0.0, %v3124_v52 }
  0xfb   :  { %v385_v60 = vadd.f32 %v1941_v58, %v1884_v59  ;;  %v1047_v58 = vmul.f32 0.0, %v3126_v57  ;;  %v2221_v59 = vpack.c.bf16 %v824_v50, %v822_v46  ;;  %1092 = vrot.lane.b32.xlu1 %v1086_v47, %s2366_s19 }
  0xfd   :  { %1053 = vrot.lane.b32.xlu0 %v1047_v58, %s2367_s0 }
 0x109   :  { %v1974_v28 = vpop.f32.mrb[2].mxu0 }
 0x10a   :  { %v1975_v61 = vpop.f32.mrb[3].mxu0 }
 0x10b   :  { %v1976_v62 = vadd.f32 %v1975_v61, %v1974_v28  ;;  %v3134_v28 = vld [vmem:[#allocation2] sm:$0xff]  ;;  %v3138_v61 = vpop.permute.xlu0 %1040 }
 0x10d   :  { %v455_v63 = vadd.f32 %v1976_v62, %v385_v60 }
 0x10f   :  { %v3140_v62 = vpop.permute.xlu0 %1116 }
 0x117   :  { %v2009_v0 = vpop.f32.mrb[2].mxu1 }
 0x118   :  { %v2010_v1 = vpop.f32.mrb[3].mxu1 }
 0x119   :  { %v2011_v2 = vadd.f32 %v2010_v1, %v2009_v0  ;;  %v1156_v0 = vpop.permute.xlu0 %1155 }
 0x11a   :  { %v1164_v1 = vmul.f32 %v3134_v28, %v1156_v0 }
 0x11b   :  { %v525_v3 = vadd.f32 %v2011_v2, %v455_v63  ;;  %v1125_v63 = vmul.f32 %v3134_v28, %v3140_v62  ;;  %v614_v2 = vld [vmem:[%s3416_s5] sm:$0x3] }
 0x11c   :  { %1170 = vrot.lane.b32.xlu1 %v1164_v1, %s2364_s13  ;;  %v619_v5 = vrot.slane %v614_v2, %v2964_v26 }
 0x11d   :  { %1131 = vrot.lane.b32.xlu0 %v1125_v63, %s2365_s16 }
 0x129   :  { %v2044_v7 = vpop.f32.mrb[4].mxu0 }
 0x12a   :  { %v2045_v12 = vpop.f32.mrb[5].mxu0 }
 0x12b   :  { %v2046_v16 = vadd.f32 %v2045_v12, %v2044_v7  ;;  %v623_v7 = vrot.slane %v614_v2, %v2967_v27 }
 0x12d   :  { %v595_v22 = vadd.f32 %v2046_v16, %v525_v3  ;;  %v719_v3 = vld [vmem:[%s3416_s5 + $0x2] sm:$0x3] }
 0x12e   :  { %v724_v6 = vrot.slane %v719_v3, %v2964_v26  ;;  %v728_v8 = vrot.slane %v719_v3, %v2967_v27 }
 0x12f   :  { %1885 = vmatmul.mubr.msk.f32.vlgmr.msra.gmra.mrb[4].mxu1 %vm626_vm1, %v595_v22  ;;  %1886 = vmatmul.mubr.msk.f32.vlgmr.msra.gmra.mrb[6].mxu0 %vm626_vm1, %v595_v22 }
 0x130   :  { %2210 = vmatpush1.bf16.msra.mxu1 %v2209_v17  ;;  %2226 = vmatpush1.bf16.msra.mxu0 %v2225_v18 }
 0x131   :  { %2212 = vmatprep.subr.bf16.mxu1 %v2211_v23  ;;  %2228 = vmatprep.subr.bf16.mxu0 %v2227_v29  ;;  %v933_v23 = vld [vmem:[%s3416_s5 + $0x6] sm:$0x3]  ;;  %v1119_v29 = vpop.permute.xlu1 %1118 }
 0x132   :  { %902 = vmatprep.mubr.f32.mxu1 %v2358_v4  ;;  %1009 = vmatprep.mubr.f32.mxu0 %v2358_v4  ;;  %v929_v4 = vld [vmem:[%s3413_s4 + $0x1b0] sm:$0xff]  ;;  %v938_v24 = vrot.slane %v933_v23, %v2964_v26  ;;  %v942_v31 = vrot.slane %v933_v23, %v2967_v27 }
 0x133   :  { %v2237_v60 = vpack.c.bf16 %v931_v51, %v929_v4  ;;  %v1043_v4 = vsel %vm1042_vm4, %v3126_v57, %v3138_v61  ;;  %v1121_v51 = vsel %vm1120_vm5, %v3140_v62, %v1119_v29 }
 0x134   :  { %2214 = vmatpush1.bf16.msra.mxu1 %v2213_v35  ;;  %2230 = vmatpush1.bf16.msra.mxu0 %v2229_v11 }
 0x135   :  { %2216 = vmatprep.subr.bf16.mxu1 %v2215_v38  ;;  %2232 = vmatprep.subr.bf16.mxu0 %v2231_v21  ;;  %v1158_v38 = vpop.permute.xlu1 %1157 }
 0x138   :  { %2218 = vmatpush1.bf16.msra.mxu1 %v2217_v44  ;;  %2234 = vmatpush1.bf16.msra.mxu0 %v2233_v45  ;;  %v1212_v44 = vpop.permute.xlu0 %1211  ;;  %v1082_v45 = vsel %vm1081_vm2, %v3124_v52, %v1080_v20 }
 0x139   :  { %2220 = vmatprep.subr.bf16.mxu1 %v2219_v48  ;;  %2236 = vmatprep.subr.bf16.mxu0 %v2235_v49  ;;  %v1214_v43 = vpop.permute.xlu1 %1213  ;;  %v1160_v48 = vsel %vm1159_vm3, %v1156_v0, %v1158_v38 }
 0x13c   :  { %2222 = vmatpush1.bf16.msra.mxu1 %v2221_v59  ;;  %2238 = vmatpush1.bf16.msra.mxu0 %v2237_v60  ;;  %v1249_v58 = vpop.permute.xlu0 %1248 }
 0x13d   :  { %v1251_v47 = vpop.permute.xlu1 %1250 }
 0x13f   :  { %1887 = vmatmul.mubr.msk.f32.vlgmr.msra.gmra.mrb[6].mxu1 %vm626_vm1, %v595_v22  ;;  %1888 = vmatmul.mubr.msk.f32.vlgmr.msra.gmra.mrb[8].mxu0 %vm626_vm1, %v595_v22  ;;  %v826_v22 = vld [vmem:[%s3416_s5 + $0x4] sm:$0x3] }
 0x140   :  { %1435 = vmatprep.mubr.f32.mxu1 %v3134_v28  ;;  %1851 = vmatprep.mubr.f32.mxu0 %v3134_v28  ;;  %v831_v25 = vrot.slane %v826_v22, %v2964_v26  ;;  %v835_v30 = vrot.slane %v826_v22, %v2967_v27 }
 0x141   :  { %v1288_v62 = vpop.permute.xlu1 %1287 }
 0x145   :  { %v1325_v22 = vpop.permute.xlu1 %1324 }
 0x202   :  { %v696_v9 = vpop.f32.mrb[4].mxu1  ;;  %v797_v10 = vpop.f32.mrb[6].mxu0 }
 0x203   :  { %v697_v12 = vadd.f32 %v696_v9, %v619_v5  ;;  %v798_v13 = vadd.f32 %v797_v10, %v724_v6  ;;  %v698_v14 = vpop.f32.mrb[5].mxu1  ;;  %v799_v15 = vpop.f32.mrb[7].mxu0  ;;  %v1295_v9 = vmul.f32 %v3134_v28, %v1288_v62 }
 0x204   :  { %v699_v16 = vadd.f32 %v698_v14, %v623_v7  ;;  %v800_v17 = vadd.f32 %v799_v15, %v728_v8  ;;  %v1286_v5 = vpop.permute.xlu0 %1285  ;;  %v1215_v8 = vsel %vm1176_vm7, %v1212_v44, %v1214_v43 }
 0x205   :  { %701 = vst [vmem:[#allocation2 + $0x8] sm:$0x3] %v697_v12  ;;  %v804_v18 = vrot.slane %v798_v13, 6  ;;  %v1221_v13 = vmul.f32 %v3134_v28, %v1214_v43 }
 0x206   :  { %702 = vst [vmem:[#allocation2 + $0x10] sm:$0x3] %v699_v16  ;;  %v805_v19 = vrot.slane %v800_v17, 6  ;;  %v1252_v16 = vsel %vm1137_vm8, %v1249_v58, %v1251_v47 }
 0x207   :  { %808 = vst [vmem:[#allocation2 + $0x8] sm:$0xc] %v804_v18  ;;  %v1258_v18 = vmul.f32 %v3134_v28, %v1251_v47 }
 0x208   :  { %809 = vst [vmem:[#allocation2 + $0x10] sm:$0xc] %v805_v19  ;;  %v1323_v23 = vpop.permute.xlu0 %1322 }
 0x212   :  { %v904_v32 = vpop.f32.mrb[6].mxu1  ;;  %v1011_v34 = vpop.f32.mrb[8].mxu0 }
 0x213   :  { %v905_v35 = vadd.f32 %v904_v32, %v831_v25  ;;  %v1012_v11 = vadd.f32 %v1011_v34, %v938_v24  ;;  %v906_v36 = vpop.f32.mrb[7].mxu1  ;;  %v1013_v37 = vpop.f32.mrb[9].mxu0  ;;  %v1332_v24 = vmul.f32 %v3134_v28, %v1325_v22 }
 0x214   :  { %v907_v21 = vadd.f32 %v906_v36, %v835_v30  ;;  %v1014_v39 = vadd.f32 %v1013_v37, %v942_v31  ;;  %v1326_v30 = vsel %vm1059_vm9, %v1323_v23, %v1325_v22  ;;  %v1461_v31 = vld [vmem:[%s3414_s8] ss:$8 sm:$0x3] }
 0x215   :  { %v911_v40 = vrot.slane %v905_v35, 4  ;;  %v1018_v33 = vrot.slane %v1012_v11, 2  ;;  %v1470_v34 = vrot.slane %v1461_v31, %v2967_v27  ;;  %v3222_v35 = vld [vmem:[%s3414_s8 + $0x1] ss:$8 sm:$0x3]  ;;  %v1466_v37 = vrot.slane %v1461_v31, %v2964_v26 }
 0x216   :  { %v912_v41 = vrot.slane %v907_v21, 4  ;;  %v1019_v42 = vrot.slane %v1014_v39, 2  ;;  %v1502_v36 = vrot.slane %v3222_v35, %v2964_v26  ;;  %v1054_v21 = vpop.permute.xlu0 %1053 }
 0x217   :  { %915 = vst [vmem:[#allocation2 + $0x8] sm:$0x30] %v911_v40  ;;  %1022 = vst [vmem:[#allocation2 + $0x8] sm:$0xc0] %v1018_v33 }
 0x218   :  { %916 = vst [vmem:[#allocation2 + $0x10] sm:$0x30] %v912_v41  ;;  %1023 = vst [vmem:[#allocation2 + $0x10] sm:$0xc0] %v1019_v42 }
 0x21a   :  { %v1132_v40 = vpop.permute.xlu0 %1131 }
 0x21e   :  { %v3169_v46 = vld [vmem:[#allocation2 + $0x8] sm:$0xff] }
 0x21f   :  { %v3172_v49 = vld [vmem:[#allocation2 + $0x10] sm:$0xff]  ;;  %v1087_v50 = vmul.f32 %v1082_v45, %v3169_v46  ;;  %v1048_v52 = vmul.f32 %v1043_v4, %v3169_v46  ;;  %v1165_v0 = vmul.f32 %v1160_v48, %v3169_v46  ;;  %v1126_v57 = vmul.f32 %v1121_v51, %v3169_v46 }
 0x220   :  { %v1088_v59 = vmul.f32 %v1080_v20, %v3172_v49  ;;  %v1049_v60 = vmul.f32 %v3138_v61, %v3172_v49  ;;  %v1166_v1 = vmul.f32 %v1158_v38, %v3172_v49  ;;  %v1127_v3 = vmul.f32 %v1119_v29, %v3172_v49  ;;  %v1093_v38 = vpop.permute.xlu1 %1092 }
 0x221   :  { %v1289_v61 = vsel %vm1098_vm6, %v1286_v5, %v1288_v62  ;;  %v1219_v12 = vmul.f32 %v1212_v44, %v3169_v46  ;;  %v1256_v14 = vmul.f32 %v1249_v58, %v3169_v46  ;;  %v1220_v15 = vmul.f32 %v1215_v8, %v3172_v49 }
 0x222   :  { %v2286_v63 = vpack.i.bf16 %v1088_v59, %v1087_v50  ;;  %v2281_v2 = vpack.i.bf16 %v1049_v60, %v1048_v52  ;;  %v2296_v6 = vpack.i.bf16 %v1166_v1, %v1165_v0  ;;  %v2291_v7 = vpack.i.bf16 %v1127_v3, %v1126_v57 }
 0x223   :  { %v1294_v10 = vmul.f32 %v1289_v61, %v3172_v49  ;;  %v1257_v19 = vmul.f32 %v1252_v16, %v3172_v49  ;;  %v2301_v20 = vpack.i.bf16 %v1221_v13, %v1220_v15  ;;  %v1293_v29 = vmul.f32 %v1286_v5, %v3169_v46 }
 0x224   :  { %2287 = vrot.lane.b32.xlu1 %v2286_v63, %s2366_s19  ;;  %2282 = vrot.lane.b32.xlu0 %v2281_v2, %s2367_s0  ;;  %v1331_v32 = vmul.f32 %v1326_v30, %v3172_v49  ;;  %v1330_v11 = vmul.f32 %v1323_v23, %v3169_v46  ;;  %v1171_v39 = vpop.permute.xlu1 %1170 }
 0x225   :  { %v2311_v17 = vpack.i.bf16 %v1295_v9, %v1294_v10  ;;  %v2306_v25 = vpack.i.bf16 %v1258_v18, %v1257_v19 }
 0x228   :  { %2297 = vrot.lane.b32.xlu1 %v2296_v6, %s2364_s13  ;;  %2292 = vrot.lane.b32.xlu0 %v2291_v7, %s2365_s16  ;;  %v1892_v6 = vld [vmem:[%s3414_s8 + $0x4] ss:$8 sm:$0x3] }
 0x229   :  { %v1189_v9 = vrot.slane %v1892_v6, %v2964_v26  ;;  %v1193_v10 = vrot.slane %v1892_v6, %v2967_v27 }
 0x22b   :  { %v1196_v16 = vmul.f32 %v1189_v9, %v3169_v46 }
 0x22c   :  { %1225 = vrot.lane.b32.xlu1 %v1219_v12, %s2363_s10  ;;  %1262 = vrot.lane.b32.xlu0 %v1256_v14, %s2362_s28 }
 0x230   :  { %2312 = vrot.lane.b32.xlu1 %v2311_v17, %s2360_s24  ;;  %2302 = vrot.lane.b32.xlu0 %v2301_v20, %s2363_s10  ;;  %v1197_v17 = vmul.f32 %v1193_v10, %v3172_v49 }
 0x234   :  { %1299 = vrot.lane.b32.xlu1 %v1293_v29, %s2360_s24  ;;  %2307 = vrot.lane.b32.xlu0 %v2306_v25, %s2362_s28 }
 0x238   :  { %1340 = vrot.lane.b32.xlu1 %v1332_v24, %s2361_s25  ;;  %1338 = vrot.lane.b32.xlu0 %v1331_v32, %s2361_s25 }
 0x23c   :  { %1473 = vrot.lane.b32.xlu1 %v1470_v34, %s2361_s25  ;;  %1336 = vrot.lane.b32.xlu0 %v1330_v11, %s2361_s25 }
 0x240   :  { %1507 = vrot.lane.b32.xlu1 %v1502_v36, %s2360_s24  ;;  %1471 = vrot.lane.b32.xlu0 %v1466_v37, %s2361_s25 }
 0x296   :  { %v2288_v33 = vpop.permute.xlu1 %2287  ;;  %v2283_v43 = vpop.permute.xlu0 %2282 }
 0x297   :  { %v2290_v41 = vunpack.i.h.bf16 %v2288_v33  ;;  %v2289_v42 = vunpack.i.l.bf16 %v2288_v33  ;;  %v2285_v44 = vunpack.i.h.bf16 %v2283_v43  ;;  %v2284_v45 = vunpack.i.l.bf16 %v2283_v43  ;;  %v1366_v33 = vld [vmem:[%s3417_s6] sm:$0xff] }
 0x299   :  { %v1099_v48 = vsel %vm1098_vm6, %v1093_v38, %v2289_v42  ;;  %v1100_v50 = vsel %vm1098_vm6, %v2289_v42, %v2290_v41  ;;  %v1060_v4 = vsel %vm1059_vm9, %v1054_v21, %v2284_v45  ;;  %v1061_v47 = vsel %vm1059_vm9, %v2284_v45, %v2285_v44  ;;  %v1899_v45 = vld [vmem:[%s3414_s8 + $0x2] ss:$8 sm:$0x3] }
 0x29a   :  { %v2298_v51 = vpop.permute.xlu1 %2297  ;;  %v2241_v58 = vpack.c.bf16 %v1099_v48, %v1060_v4  ;;  %v2293_v60 = vpop.permute.xlu0 %2292  ;;  %v2239_v63 = vpack.c.bf16 %v1100_v50, %v1061_v47  ;;  %v1538_v48 = vrot.slane %v1899_v45, %v2964_v26  ;;  %v1900_v50 = vld [vmem:[%s3414_s8 + $0x3] ss:$8 sm:$0x3]  ;;  %v1902_v47 = vld [vmem:[%s3414_s8 + $0x5] ss:$8 sm:$0x3] }
 0x29b   :  { %v2300_v59 = vunpack.i.h.bf16 %v2298_v51  ;;  %v2299_v52 = vunpack.i.l.bf16 %v2298_v51  ;;  %v2295_v0 = vunpack.i.h.bf16 %v2293_v60  ;;  %v2294_v1 = vunpack.i.l.bf16 %v2293_v60 }
 0x29c   :  { %2240 = vmatprep.subr.bf16.mxu1 %v2239_v63  ;;  %v1574_v4 = vrot.slane %v1900_v50, %v2964_v26  ;;  %v1506_v51 = vrot.slane %v3222_v35, %v2967_v27  ;;  %v1578_v60 = vrot.slane %v1900_v50, %v2967_v27  ;;  %v1904_v63 = vld [vmem:[%s3414_s8 + $0x7] ss:$8 sm:$0x3] }
 0x29d   :  { %v1177_v2 = vsel %vm1176_vm7, %v1171_v39, %v2299_v52  ;;  %v1178_v57 = vsel %vm1176_vm7, %v2299_v52, %v2300_v59  ;;  %v1138_v3 = vsel %vm1137_vm8, %v1132_v40, %v2294_v1  ;;  %2242 = vmatpush1.bf16.msra.mxu1 %v2241_v58  ;;  %v1139_v5 = vsel %vm1137_vm8, %v2294_v1, %v2295_v0  ;;  %v1903_v52 = vld [vmem:[%s3414_s8 + $0x6] ss:$8 sm:$0x3] }
 0x29e   :  { %v1226_v62 = vpop.permute.xlu1 %1225  ;;  %v2245_v61 = vpack.c.bf16 %v1177_v2, %v1138_v3  ;;  %v1263_v7 = vpop.permute.xlu0 %1262  ;;  %v2243_v8 = vpack.c.bf16 %v1178_v57, %v1139_v5  ;;  %v1626_v58 = vrot.slane %v1902_v47, %v2964_v26  ;;  %v1542_v59 = vrot.slane %v1899_v45, %v2967_v27  ;;  %v1905_v2 = vld [vmem:[%s3414_s8 + $0x10] ss:$8 sm:$0x3] }
 0x29f   :  { %v1662_v35 = vrot.slane %v1903_v52, %v2964_v26  ;;  %v1698_v0 = vrot.slane %v1904_v63, %v2964_v26  ;;  %v1630_v1 = vrot.slane %v1902_v47, %v2967_v27  ;;  %v1734_v57 = vrot.slane %v1905_v2, %v2964_v26 }
 0x2a0   :  { %2244 = vmatprep.subr.bf16.mxu1 %v2243_v8  ;;  %v1666_v3 = vrot.slane %v1903_v52, %v2967_v27 }
 0x2a1   :  { %2246 = vmatpush1.bf16.msra.mxu1 %v2245_v61  ;;  %v1702_v61 = vrot.slane %v1904_v63, %v2967_v27 }
 0x2a2   :  { %v2313_v12 = vpop.permute.xlu1 %2312  ;;  %v2303_v13 = vpop.permute.xlu0 %2302 }
 0x2a3   :  { %v2305_v14 = vunpack.i.h.bf16 %v2303_v13  ;;  %v2304_v15 = vunpack.i.l.bf16 %v2303_v13  ;;  %v2315_v18 = vunpack.i.h.bf16 %v2313_v12  ;;  %v2314_v19 = vunpack.i.l.bf16 %v2313_v12 }
 0x2a5   :  { %v1231_v20 = vsel %vm1159_vm3, %v1226_v62, %v2304_v15  ;;  %v1232_v23 = vsel %vm1159_vm3, %v2304_v15, %v2305_v14  ;;  %v1306_v49 = vsel %vm1081_vm2, %v2314_v19, %v2315_v18 }
 0x2a6   :  { %v1300_v22 = vpop.permute.xlu1 %1299  ;;  %v2249_v29 = vpack.c.bf16 %v1231_v20, %v1196_v16  ;;  %v2308_v25 = vpop.permute.xlu0 %2307  ;;  %v2247_v24 = vpack.c.bf16 %v1232_v23, %v1197_v17 }
 0x2a7   :  { %v2310_v30 = vunpack.i.h.bf16 %v2308_v25  ;;  %v2309_v31 = vunpack.i.l.bf16 %v2308_v25  ;;  %v1305_v32 = vsel %vm1081_vm2, %v1300_v22, %v2314_v19 }
 0x2a8   :  { %2248 = vmatprep.subr.bf16.mxu1 %v2247_v24 }
 0x2a9   :  { %v1268_v34 = vsel %vm1120_vm5, %v1263_v7, %v2309_v31  ;;  %2250 = vmatpush1.bf16.msra.mxu1 %v2249_v29  ;;  %v1269_v46 = vsel %vm1120_vm5, %v2309_v31, %v2310_v30  ;;  %v1738_v7 = vrot.slane %v1905_v2, %v2967_v27 }
 0x2aa   :  { %v2253_v11 = vpack.c.bf16 %v1305_v32, %v1268_v34  ;;  %v1341_v36 = vpop.permute.xlu1 %1340  ;;  %v1339_v37 = vpop.permute.xlu0 %1338  ;;  %v2251_v38 = vpack.c.bf16 %v1306_v49, %v1269_v46 }
 0x2ab   :  { %v1343_v21 = vsel %vm1042_vm4, %v1339_v37, %v1341_v36 }
 0x2ac   :  { %2252 = vmatprep.subr.bf16.mxu1 %v2251_v38 }
 0x2ad   :  { %2254 = vmatpush1.bf16.msra.mxu1 %v2253_v11 }
 0x2ae   :  { %v1337_v39 = vpop.permute.xlu0 %1336  ;;  %1387 = vmatprep.subr.mxu1 %v1343_v21  ;;  %v1474_v5 = vpop.permute.xlu1 %1473 }
 0x2af   :  { %v1342_v40 = vsel %vm1042_vm4, %v1337_v39, %v1339_v37 }
 0x2b1   :  { %1388 = vmatpush1.msra.mxu1 %v1342_v40 }
 0x2b2   :  { %1897 = vmatmul.mubr.msk.f32.vlgmr.msra.gmra.mrb[8].mxu1 %vm1367_vm10, %v1366_v33  ;;  %v1472_v62 = vpop.permute.xlu0 %1471  ;;  %v1508_v8 = vpop.permute.xlu1 %1507 }
 0x2b3   :  { %v1479_v6 = vmul.f32 %v3134_v28, %v1472_v62  ;;  %v1515_v9 = vmul.f32 %v3134_v28, %v1508_v8  ;;  %v1475_v39 = vsel %vm1042_vm4, %v1472_v62, %v1474_v5 }
 0x385   :  { %v3259_v41 = vpop.f32.mrb[8].mxu1 }
 0x386   :  { %v3261_v42 = vpop.f32.mrb[9].mxu1 }
 0x387   :  { %v1445_v43 = vmax.f32 %v3259_v41, %v3261_v42  ;;  %v1442_v44 = vmin.f32 %v3259_v41, %v3261_v42 }
 0x389   :  { %1446 = vmax.xlane.f32.xlu0 %v1445_v43  ;;  %1443 = vmin.xlane.f32.xlu1 %v1442_v44 }
 0x39a   :  { %1543 = vrot.lane.b32.xlu1 %v1538_v48, %s2362_s28 }
 0x39e   :  { %1579 = vrot.lane.b32.xlu1 %v1574_v4, %s2363_s10 }
 0x39f   :  { %1509 = vrot.lane.b32.xlu0 %v1506_v51, %s2360_s24 }
 0x3a2   :  { %1631 = vrot.lane.b32.xlu1 %v1626_v58, %s2364_s13 }
 0x3a3   :  { %1545 = vrot.lane.b32.xlu0 %v1542_v59, %s2362_s28 }
 0x3a6   :  { %1667 = vrot.lane.b32.xlu1 %v1662_v35, %s2365_s16 }
 0x3a7   :  { %1581 = vrot.lane.b32.xlu0 %v1578_v60, %s2363_s10 }
 0x3aa   :  { %1703 = vrot.lane.b32.xlu1 %v1698_v0, %s2366_s19 }
 0x3ab   :  { %1633 = vrot.lane.b32.xlu0 %v1630_v1, %s2364_s13 }
 0x3ae   :  { %1739 = vrot.lane.b32.xlu1 %v1734_v57, %s2367_s0 }
 0x3af   :  { %1669 = vrot.lane.b32.xlu0 %v1666_v3, %s2365_s16 }
 0x3b2   :  { %1485 = vrot.lane.b32.xlu1 %v1479_v6, %s2367_s0 }
 0x3b3   :  { %1705 = vrot.lane.b32.xlu0 %v1702_v61, %s2366_s19 }
 0x3b7   :  { %1741 = vrot.lane.b32.xlu0 %v1738_v7, %s2367_s0 }
 0x3bb   :  { %1521 = vrot.lane.b32.xlu0 %v1515_v9, %s2366_s19 }
 0x416   :  { %v1447_v10 = vpop.xlane.xlu0 %1446  ;;  %v1444_v12 = vpop.xlane.xlu1 %1443 }
 0x417   :  { %v1450_v13 = vsub.f32 %v1447_v10, %v1444_v12  ;;  %v1448_v29 = vsub.f32 %v3259_v41, %v1444_v12  ;;  %v1449_v25 = vsub.f32 %v3261_v42, %v1444_v12 }
 0x419   :  { %v1451_v14 = vadd.f32 1e-08, %v1450_v13 }
 0x41a   :  { %v1510_v15 = vpop.permute.xlu0 %1509  ;;  %v1544_v16 = vpop.permute.xlu1 %1543 }
 0x41b   :  { %2351 = vrcp.f32 %v1451_v14  ;;  %v1551_v17 = vmul.f32 %v3134_v28, %v1544_v16  ;;  %v1511_v46 = vsel %vm1081_vm2, %v1508_v8, %v1510_v15 }
 0x41d   :  { %1557 = vrot.lane.b32.xlu1 %v1551_v17, %s2365_s16 }
 0x41e   :  { %v1546_v18 = vpop.permute.xlu0 %1545  ;;  %v1580_v19 = vpop.permute.xlu1 %1579 }
 0x41f   :  { %v1587_v20 = vmul.f32 %v3134_v28, %v1580_v19  ;;  %v1547_v49 = vsel %vm1120_vm5, %v1544_v16, %v1546_v18 }
 0x421   :  { %1593 = vrot.lane.b32.xlu0 %v1587_v20, %s2364_s13 }
 0x422   :  { %v1582_v22 = vpop.permute.xlu0 %1581  ;;  %v1632_v23 = vpop.permute.xlu1 %1631 }
 0x423   :  { %v1583_v32 = vsel %vm1159_vm3, %v1580_v19, %v1582_v22 }
 0x425   :  { %v2352_v24 = vpop.eup %2351 }
 0x426   :  { %v3322_v30 = vmul.f32 %v2352_v24, %v1448_v29  ;;  %v3324_v31 = vmul.f32 %v2352_v24, %v1449_v25  ;;  %v1634_v34 = vpop.permute.xlu0 %1633  ;;  %v1668_v21 = vpop.permute.xlu1 %1667 }
 0x427   :  { %v1635_v47 = vsel %vm1176_vm7, %v1632_v23, %v1634_v34  ;;  %v1641_v59 = vmul.f32 %v3134_v28, %v1634_v34  ;;  %v1901_v34 = vld [vmem:[%s3414_s8 + $0x4] ss:$8 sm:$0x3] }
 0x428   :  { %1455 = vst [vmem:[#allocation2 + $0x8] sm:$0xff] %v3322_v30  ;;  %1456 = vst [vmem:[#allocation2 + $0x10] sm:$0xff] %v3324_v31  ;;  %v1516_v11 = vmul.f32 %v1511_v46, %v3322_v30  ;;  %v1517_v36 = vmul.f32 %v1510_v15, %v3324_v31  ;;  %v1552_v37 = vmul.f32 %v1547_v49, %v3322_v30 }
 0x429   :  { %v1553_v38 = vmul.f32 %v1546_v18, %v3324_v31  ;;  %v1588_v40 = vmul.f32 %v1583_v32, %v3322_v30  ;;  %v1589_v33 = vmul.f32 %v1582_v22, %v3324_v31  ;;  %v1480_v44 = vmul.f32 %v1475_v39, %v3322_v30 }
 0x42a   :  { %v2321_v41 = vpack.i.bf16 %v1517_v36, %v1516_v11  ;;  %v1670_v43 = vpop.permute.xlu0 %1669  ;;  %v1481_v48 = vmul.f32 %v1474_v5, %v3324_v31  ;;  %v1704_v50 = vpop.permute.xlu1 %1703  ;;  %v1639_v52 = vmul.f32 %v1632_v23, %v3322_v30  ;;  %v1640_v35 = vmul.f32 %v1635_v47, %v3324_v31 }
 0x42b   :  { %v2326_v42 = vpack.i.bf16 %v1553_v38, %v1552_v37  ;;  %v2331_v45 = vpack.i.bf16 %v1589_v33, %v1588_v40  ;;  %v1671_v0 = vsel %vm1137_vm8, %v1668_v21, %v1670_v43  ;;  %v1677_v57 = vmul.f32 %v3134_v28, %v1670_v43 }
 0x42c   :  { %2322 = vrot.lane.b32.xlu0 %v2321_v41, %s2366_s19  ;;  %v2316_v51 = vpack.i.bf16 %v1481_v48, %v1480_v44  ;;  %v2336_v1 = vpack.i.bf16 %v1641_v59, %v1640_v35  ;;  %v1676_v2 = vmul.f32 %v1671_v0, %v3324_v31  ;;  %v1711_v5 = vmul.f32 %v1704_v50, %v3322_v30 }
 0x42d   :  { %v1675_v7 = vmul.f32 %v1668_v21, %v3322_v30  ;;  %v1610_v40 = vrot.slane %v1901_v34, %v2964_v26  ;;  %v1614_v33 = vrot.slane %v1901_v34, %v2967_v27 }
 0x42e   :  { %v1706_v4 = vpop.permute.xlu0 %1705  ;;  %2317 = vrot.lane.b32.xlu1 %v2316_v51, %s2367_s0  ;;  %v2341_v62 = vpack.i.bf16 %v1677_v57, %v1676_v2  ;;  %v1740_v8 = vpop.permute.xlu1 %1739 }
 0x42f   :  { %v1707_v58 = vsel %vm1098_vm6, %v1704_v50, %v1706_v4  ;;  %v1713_v63 = vmul.f32 %v3134_v28, %v1706_v4  ;;  %v1747_v12 = vmul.f32 %v1740_v8, %v3322_v30  ;;  %v1618_v26 = vmul.f32 %v1614_v33, %v3324_v31 }
 0x430   :  { %2332 = vrot.lane.b32.xlu0 %v2331_v45, %s2364_s13  ;;  %v1712_v60 = vmul.f32 %v1707_v58, %v3324_v31  ;;  %v1617_v58 = vmul.f32 %v1610_v40, %v3322_v30 }
 0x432   :  { %2327 = vrot.lane.b32.xlu1 %v2326_v42, %s2365_s16  ;;  %v2346_v3 = vpack.i.bf16 %v1713_v63, %v1712_v60  ;;  %v1742_v6 = vpop.permute.xlu0 %1741  ;;  %v1486_v14 = vpop.permute.xlu1 %1485 }
 0x433   :  { %v1749_v61 = vmul.f32 %v3134_v28, %v1742_v6  ;;  %v1743_v9 = vsel %vm1059_vm9, %v1740_v8, %v1742_v6 }
 0x434   :  { %1645 = vrot.lane.b32.xlu0 %v1639_v52, %s2363_s10  ;;  %v1748_v10 = vmul.f32 %v1743_v9, %v3324_v31  ;;  %v1783_v9 = vld [vmem:[%s3418_s7] sm:$0xff] }
 0x436   :  { %2337 = vrot.lane.b32.xlu1 %v2336_v1, %s2363_s10  ;;  %v1522_v28 = vpop.permute.xlu0 %1521 }
 0x438   :  { %2347 = vrot.lane.b32.xlu0 %v2346_v3, %s2360_s24 }
 0x43a   :  { %2342 = vrot.lane.b32.xlu1 %v2341_v62, %s2362_s28 }
 0x43c   :  { %1717 = vrot.lane.b32.xlu0 %v1711_v5, %s2360_s24 }
 0x43e   :  { %1681 = vrot.lane.b32.xlu1 %v1675_v7, %s2362_s28 }
 0x440   :  { %1757 = vrot.lane.b32.xlu0 %v1749_v61, %s2361_s25 }
 0x442   :  { %1755 = vrot.lane.b32.xlu1 %v1748_v10, %s2361_s25 }
 0x446   :  { %1753 = vrot.lane.b32.xlu1 %v1747_v12, %s2361_s25 }
 0x45f   :  { %147 = vmin.xlane.f32.xlu0 %v146_v55 }
 0x46a   :  { %150 = vmax.xlane.f32.xlu1 %v149_v56 }
 0x48f   :  { %v1558_v15 = vpop.permute.xlu1 %1557 }
 0x493   :  { %v1594_v13 = vpop.permute.xlu0 %1593 }
 0x49e   :  { %v2323_v16 = vpop.permute.xlu0 %2322 }
 0x49f   :  { %v2325_v17 = vunpack.i.h.bf16 %v2323_v16  ;;  %v2324_v18 = vunpack.i.l.bf16 %v2323_v16 }
 0x4a0   :  { %v2318_v20 = vpop.permute.xlu1 %2317 }
 0x4a1   :  { %v1527_v19 = vsel %vm1098_vm6, %v1522_v28, %v2324_v18  ;;  %v1528_v23 = vsel %vm1098_vm6, %v2324_v18, %v2325_v17  ;;  %v2320_v29 = vunpack.i.h.bf16 %v2318_v20  ;;  %v2319_v25 = vunpack.i.l.bf16 %v2318_v20 }
 0x4a2   :  { %v2333_v22 = vpop.permute.xlu0 %2332 }
 0x4a3   :  { %v2335_v55 = vunpack.i.h.bf16 %v2333_v22  ;;  %v2334_v24 = vunpack.i.l.bf16 %v2333_v22  ;;  %v1491_v32 = vsel %vm1059_vm9, %v1486_v14, %v2319_v25  ;;  %v1492_v56 = vsel %vm1059_vm9, %v2319_v25, %v2320_v29 }
 0x4a4   :  { %v2257_v46 = vpack.c.bf16 %v1527_v19, %v1491_v32  ;;  %v2328_v49 = vpop.permute.xlu1 %2327  ;;  %v2255_v11 = vpack.c.bf16 %v1528_v23, %v1492_v56 }
 0x4a5   :  { %v1599_v37 = vsel %vm1176_vm7, %v1594_v13, %v2334_v24  ;;  %v2330_v38 = vunpack.i.h.bf16 %v2328_v49  ;;  %v2329_v21 = vunpack.i.l.bf16 %v2328_v49  ;;  %v1600_v39 = vsel %vm1176_vm7, %v2334_v24, %v2335_v55 }
 0x4a6   :  { %v1646_v36 = vpop.permute.xlu0 %1645  ;;  %2256 = vmatprep.subr.bf16.mxu0 %v2255_v11 }
 0x4a7   :  { %v1563_v41 = vsel %vm1137_vm8, %v1558_v15, %v2329_v21  ;;  %2258 = vmatpush1.bf16.msra.mxu0 %v2257_v46  ;;  %v1564_v42 = vsel %vm1137_vm8, %v2329_v21, %v2330_v38 }
 0x4a8   :  { %v2261_v43 = vpack.c.bf16 %v1599_v37, %v1563_v41  ;;  %v2338_v44 = vpop.permute.xlu1 %2337  ;;  %v2259_v45 = vpack.c.bf16 %v1600_v39, %v1564_v42 }
 0x4a9   :  { %v2340_v50 = vunpack.i.h.bf16 %v2338_v44  ;;  %v2339_v4 = vunpack.i.l.bf16 %v2338_v44 }
 0x4aa   :  { %v2348_v48 = vpop.permute.xlu0 %2347  ;;  %2260 = vmatprep.subr.bf16.mxu0 %v2259_v45 }
 0x4ab   :  { %v2350_v51 = vunpack.i.h.bf16 %v2348_v48  ;;  %v2349_v47 = vunpack.i.l.bf16 %v2348_v48  ;;  %v1651_v27 = vsel %vm1159_vm3, %v1646_v36, %v2339_v4  ;;  %2262 = vmatpush1.bf16.msra.mxu0 %v2261_v43  ;;  %v1652_v59 = vsel %vm1159_vm3, %v2339_v4, %v2340_v50 }
 0x4ac   :  { %v2265_v52 = vpack.c.bf16 %v1651_v27, %v1617_v58  ;;  %v2343_v35 = vpop.permute.xlu1 %2342  ;;  %v2263_v60 = vpack.c.bf16 %v1652_v59, %v1618_v26 }
 0x4ad   :  { %v2345_v0 = vunpack.i.h.bf16 %v2343_v35  ;;  %v2344_v1 = vunpack.i.l.bf16 %v2343_v35  ;;  %v1724_v2 = vsel %vm1081_vm2, %v2349_v47, %v2350_v51 }
 0x4ae   :  { %v1718_v63 = vpop.permute.xlu0 %1717  ;;  %2264 = vmatprep.subr.bf16.mxu0 %v2263_v60 }
 0x4af   :  { %2266 = vmatpush1.bf16.msra.mxu0 %v2265_v52  ;;  %v1723_v30 = vsel %vm1081_vm2, %v1718_v63, %v2349_v47  ;;  %v1688_v57 = vsel %vm1120_vm5, %v2344_v1, %v2345_v0 }
 0x4b0   :  { %v1682_v31 = vpop.permute.xlu1 %1681  ;;  %v2267_v3 = vpack.c.bf16 %v1724_v2, %v1688_v57 }
 0x4b1   :  { %v1687_v62 = vsel %vm1120_vm5, %v1682_v31, %v2344_v1 }
 0x4b2   :  { %v2269_v5 = vpack.c.bf16 %v1723_v30, %v1687_v62  ;;  %2268 = vmatprep.subr.bf16.mxu0 %v2267_v3  ;;  %v1758_v6 = vpop.permute.xlu0 %1757 }
 0x4b4   :  { %v1756_v61 = vpop.permute.xlu1 %1755  ;;  %2270 = vmatpush1.bf16.msra.mxu0 %v2269_v5 }
 0x4b5   :  { %v1760_v7 = vsel %vm1042_vm4, %v1756_v61, %v1758_v6 }
 0x4b6   :  { %1803 = vmatprep.subr.mxu0 %v1760_v7 }
 0x4b8   :  { %v1754_v8 = vpop.permute.xlu1 %1753 }
 0x4b9   :  { %v1759_v10 = vsel %vm1042_vm4, %v1754_v8, %v1756_v61 }
 0x4ba   :  { %1804 = vmatpush1.msra.mxu0 %v1759_v10 }
 0x4bb   :  { %1906 = vmatmul.mubr.msk.f32.vlgmr.msra.gmra.mrb[10].mxu0 %vm1367_vm10, %v1783_v9 }
 0x4ec   :  { %v148_v15 = vpop.xlane.xlu0 %147 }
 0x4ed   :  { %v152_v25 = vsub.f32 %v3025_v53, %v148_v15  ;;  %v153_v55 = vsub.f32 %v3027_v54, %v148_v15 }
 0x4f7   :  { %v151_v16 = vpop.xlane.xlu1 %150 }
 0x4f8   :  { %v154_v17 = vsub.f32 %v151_v16, %v148_v15 }
 0x4fa   :  { %v155_v19 = vadd.f32 1e-08, %v154_v17 }
 0x4fc   :  { %2353 = vrcp.f32 %v155_v19 }
 0x506   :  { %v2354_v29 = vpop.eup %2353 }
 0x507   :  { %v157_v34 = vmul.f32 %v2354_v29, %v152_v25  ;;  %v158_v46 = vmul.f32 %v2354_v29, %v153_v55 }
 0x58e   :  { %v1853_v12 = vpop.f32.mrb[10].mxu0 }
 0x58f   :  { %v1855_v28 = vpop.f32.mrb[11].mxu0 }
 0x590   :  { %v1858_v13 = vmin.f32 %v1853_v12, %v1855_v28  ;;  %v1861_v14 = vmax.f32 %v1853_v12, %v1855_v28 }
 0x592   :  { %1859 = vmin.xlane.f32.xlu0 %v1858_v13 }
 0x596   :  { %1862 = vmax.xlane.f32.xlu0 %v1861_v14 }
 0x61f   :  { %v1860_v18 = vpop.xlane.xlu0 %1859 }
 0x620   :  { %v1864_v24 = vsub.f32 %v1853_v12, %v1860_v18  ;;  %v1865_v32 = vsub.f32 %v1855_v28, %v1860_v18 }
 0x623   :  { %v1863_v20 = vpop.xlane.xlu0 %1862 }
 0x624   :  { %v1866_v22 = vsub.f32 %v1863_v20, %v1860_v18 }
 0x626   :  { %v1867_v23 = vadd.f32 1e-08, %v1866_v22 }
 0x628   :  { %2355 = vrcp.f32 %v1867_v23 }
 0x632   :  { %v2356_v56 = vpop.eup %2355 }
 0x633   :  { %v1869_v49 = vmul.f32 %v2356_v56, %v1864_v24  ;;  %v1870_v11 = vmul.f32 %v2356_v56, %v1865_v32 }
 0x635   :  { %v1871_v36 = vadd.f32 %v1869_v49, %v157_v34  ;;  %v1872_v37 = vadd.f32 %v1870_v11, %v158_v46 }
 0x637   :  { %1873 = vst [vmem:[%s3419_s9] sm:$0xff] %v1871_v36  ;;  %1874 = vst [vmem:[%s3419_s9 + $0x8] sm:$0xff] %v1872_v37 }

</bundles_post_ra>
